<compile_context>
chip_gen: v7x
topology: tpu7x:2x2x1
jax: 0.10.0
libtpu: 0.0.40
codegen_flags: <defaults>
</compile_context>

<pallas_src>
import functools
import math

import jax
import jax.numpy as jnp
from jax.experimental import pallas as pl
from jax.experimental.pallas import tpu as pltpu

LEAKY_SLOPE = 0.2   # nn.init.kaiming_normal_(a=0.2) / LeakyReLU(0.2) as in the PyTorch module


# ---------------------------------------------------------------------------
# Pallas kernels
# ---------------------------------------------------------------------------
def _mm_bias_act_kernel(a_ref, b_ref, bias_ref, o_ref, *, slope):
    acc = jnp.dot(a_ref[...], b_ref[...], preferred_element_type=jnp.float32)
    acc = acc + bias_ref[...]
    if slope is not None:
        acc = jnp.where(acc >= 0.0, acc, acc * slope)
    o_ref[...] = acc.astype(o_ref.dtype)


def _pick_tm(M):
    # Prefer >= 2 M-blocks so both TensorCores get work on v7x; bigger tiles otherwise.
    for tm in (512, 256, 128):
        if M >= 2 * tm:
            return tm
    return 128


def matmul_bias_act(a, b, bias, slope, out_dtype=jnp.bfloat16):
    """act(a @ b + bias) on the MXU. a:[M,K] bf16, b:[K,N] bf16 (K,N multiples of 128)."""
    M, K = a.shape
    K2, N = b.shape
    assert K == K2 and K % 128 == 0 and N % 128 == 0
    TM = _pick_tm(M)
    Mp = pl.cdiv(M, TM) * TM
    if Mp != M:
        a = jnp.pad(a, ((0, Mp - M), (0, 0)))
    out = pl.pallas_call(
        functools.partial(_mm_bias_act_kernel, slope=slope),
        out_shape=jax.ShapeDtypeStruct((Mp, N), out_dtype),
        grid=(Mp // TM,),
        in_specs=[
            pl.BlockSpec((TM, K), lambda i: (i, 0)),
            pl.BlockSpec((K, N), lambda i: (0, 0)),   # weight stays resident across M tiles
            pl.BlockSpec((1, N), lambda i: (0, 0)),
        ],
        out_specs=pl.BlockSpec((TM, N), lambda i: (i, 0)),
        compiler_params=pltpu.CompilerParams(dimension_semantics=("parallel",)),
    )(a, b, bias.reshape(1, N))
    return out if Mp == M else out[:M]


def _corr_kernel(key_ref, warp_ref, mask_ref, o_ref, *, inv_c):
    k = key_ref[0].astype(jnp.float32)                 # [C, P]   (P on lanes)
    w = warp_ref[0].astype(jnp.float32)                # [C, TD, P]
    s = jnp.sum(w * k[:, None, :], axis=0)             # reduce over C -> [TD, P]
    o_ref[0] = s * inv_c * mask_ref[0]


def planesweep_corr_reduce(key_cp, warped, masks):
    """corr[b,d,p] = mask * mean_c(key[b,c,p] * warped[b,c,d,p]); P lane-dense, tiled over D."""
    B, C, D, P = warped.shape
    assert P % 128 == 0
    td = 32 if D % 32 == 0 else (8 if D % 8 == 0 else D)
    return pl.pallas_call(
        functools.partial(_corr_kernel, inv_c=1.0 / C),
        out_shape=jax.ShapeDtypeStruct((B, D, P), jnp.float32),
        grid=(B, D // td),
        in_specs=[
            pl.BlockSpec((1, C, P), lambda b, d: (b, 0, 0)),
            pl.BlockSpec((1, C, td, P), lambda b, d: (b, 0, d, 0)),
            pl.BlockSpec((1, td, P), lambda b, d: (b, d, 0)),
        ],
        out_specs=pl.BlockSpec((1, td, P), lambda b, d: (b, d, 0)),
        compiler_params=pltpu.CompilerParams(dimension_semantics=("parallel", "parallel")),
    )(key_cp, warped, masks)


def _fusion_kernel(corr_ref, valid_ref, w_ref, o_ref):
    corr = corr_ref[0]                                  # [S, D, TP]
    w = w_ref[...]                                      # [D, 1]
    logits = jnp.sum(corr * w[None, :, :], axis=1)      # per-source logit over D -> [S, TP]
    logits = logits + (valid_ref[0] - 1.0) * 1e4        # suppress fully-invalid sources
    m = jnp.max(logits, axis=0, keepdims=True)
    e = jnp.exp(logits - m)
    wsm = e / jnp.sum(e, axis=0, keepdims=True)         # softmax over sources
    o_ref[0] = jnp.sum(corr * wsm[:, None, :], axis=0)  # [D, TP]


def fuse_correlations(corrs, any_valids, w):
    """Softmax-weighted fusion of per-source correlation volumes (logit fused in-kernel)."""
    B, S, D, P = corrs.shape
    assert P % 128 == 0
    tp = 512 if P % 512 == 0 else (256 if P % 256 == 0 else 128)
    return pl.pallas_call(
        _fusion_kernel,
        out_shape=jax.ShapeDtypeStruct((B, D, P), jnp.float32),
        grid=(B, P // tp),
        in_specs=[
            pl.BlockSpec((1, S, D, tp), lambda b, p: (b, 0, 0, p)),
            pl.BlockSpec((1, S, tp), lambda b, p: (b, 0, p)),
            pl.BlockSpec((D, 1), lambda b, p: (0, 0)),
        ],
        out_specs=pl.BlockSpec((1, D, tp), lambda b, p: (b, 0, p)),
        compiler_params=pltpu.CompilerParams(dimension_semantics=("parallel", "parallel")),
    )(corrs, any_valids, w)


def _head_kernel(inv_ref, logb_ref, d_ref, u_ref):
    r = pl.reciprocal(inv_ref[...] + 1e-9, approx=True)   # EUP reciprocal (free slot)
    d_ref[...] = r
    u_ref[...] = jnp.exp(logb_ref[...]) * r


def depth_head(invdepth, invdepth_log_b):
    """depth = 1/(invdepth+1e-9); uncertainty = exp(log_b)/(invdepth+1e-9). Lane-dense (x, 128)."""
    shp = invdepth.shape
    n = invdepth.size
    cols = 128
    rows = pl.cdiv(pl.cdiv(n, cols), 8) * 8
    tot = rows * cols
    inv2 = jnp.pad(invdepth.reshape(-1), (0, tot - n)).reshape(rows, cols)
    logb2 = jnp.pad(invdepth_log_b.reshape(-1), (0, tot - n)).reshape(rows, cols)
    depth, unc = pl.pallas_call(
        _head_kernel,
        out_shape=(jax.ShapeDtypeStruct((rows, cols), jnp.float32),
                   jax.ShapeDtypeStruct((rows, cols), jnp.float32)),
    )(inv2, logb2)
    return depth.reshape(-1)[:n].reshape(shp), unc.reshape(-1)[:n].reshape(shp)


# ---------------------------------------------------------------------------
# Conv helpers (im2col is layout glue; the matmul hot path is the Pallas kernel)
# TODO(synk): im2col patch extraction stays outside the Pallas pipeline (XLA-fused slices);
#             a fused in-kernel window-shift accumulation would need Element-offset BlockSpecs.
# ---------------------------------------------------------------------------
def _im2col(x, kh, kw, stride, pad):
    """x [n,h,w,c] -> bf16 patches [n*oh*ow, Kpad (mult of 128)], (n, oh, ow). pad=(t,b,l,r)."""
    x = x.astype(jnp.bfloat16)
    n, h, w, c = x.shape
    pt, pb, pl_, pr = pad
    xp = jnp.pad(x, ((0, 0), (pt, pb), (pl_, pr), (0, 0)))
    hp, wp = h + pt + pb, w + pl_ + pr
    oh = (hp - kh) // stride + 1
    ow = (wp - kw) // stride + 1
    cols = []
    for i in range(kh):
        for j in range(kw):
            sl = jax.lax.slice(
                xp, (0, i, j, 0),
                (n, i + (oh - 1) * stride + 1, j + (ow - 1) * stride + 1, c),
                (1, stride, stride, 1))
            cols.append(sl)                               # order (ki, kj, cin) matches weights
    K = kh * kw * c
    Kp = pl.cdiv(K, 128) * 128
    if Kp != K:
        cols.append(jnp.zeros((n, oh, ow, Kp - K), jnp.bfloat16))
    patches = jnp.concatenate(cols, axis=-1)
    return patches.reshape(n * oh * ow, Kp), (n, oh, ow)


def _pad_weight(w2d, b, cout):
    """[K, cout] -> bf16 [Kpad, Npad], f32 bias [Npad]."""
    K = w2d.shape[0]
    Kp = pl.cdiv(K, 128) * 128
    Np = pl.cdiv(cout, 128) * 128
    w2d = jnp.pad(w2d, ((0, Kp - K), (0, Np - cout))).astype(jnp.bfloat16)
    b2 = jnp.pad(b, (0, Np - cout)).astype(jnp.float32)
    return w2d, b2


def conv2d(x, wb, stride, slope=LEAKY_SLOPE, pad=None, out_dtype=jnp.bfloat16):
    w, b = wb
    kh, kw, cin, cout = w.shape
    if pad is None:
        p = (kh - 1) // 2                                 # "same"-style padding as rmvd conv helper
        pad = (p, p, p, p)
    elif isinstance(pad, int):
        pad = (pad, pad, pad, pad)
    patches, (n, oh, ow) = _im2col(x, kh, kw, stride, pad)
    w2, b2 = _pad_weight(w.reshape(kh * kw * cin, cout), b, cout)
    out = matmul_bias_act(patches, w2, b2, slope, out_dtype=out_dtype)
    return out[:, :cout].reshape(n, oh, ow, cout)


def deconv2d(x, wb, slope=LEAKY_SLOPE):
    """nn.ConvTranspose2d(k=4, s=2, p=1) via the 4-phase sub-pixel decomposition (no zero MACs).
    Matches zero-insertion + stride-1 conv with the stored (unflipped) 4x4 kernel."""
    w, b = wb                                             # [4, 4, cin, cout]
    n, h, wd, c = x.shape
    cout = w.shape[-1]
    # single shared 2x2 im2col over x padded by 1 on each side -> (h+1)*(w+1) patch rows
    patches, (_, ohp, owp) = _im2col(x, 2, 2, 1, (1, 1, 1, 1))
    # combined phase weights, phase p = dy*2 + dx
    phase_ws = [w[dy::2, dx::2, :, :] for dy in (0, 1) for dx in (0, 1)]   # each [2,2,cin,cout]
    w_all = jnp.concatenate(phase_ws, axis=-1).reshape(4 * c, 4 * cout)
    b_all = jnp.tile(b, 4)
    w2, b2 = _pad_weight(w_all, b_all, 4 * cout)
    res = matmul_bias_act(patches, w2, b2, slope)[:, :4 * cout]
    res = res.reshape(n, ohp, owp, 4, cout)               # ohp = h+1, owp = wd+1
    p00 = res[:, 0:h, 0:wd, 0, :]
    p01 = res[:, 0:h, 1:wd + 1, 1, :]
    p10 = res[:, 1:h + 1, 0:wd, 2, :]
    p11 = res[:, 1:h + 1, 1:wd + 1, 3, :]
    stk = jnp.stack([p00, p01, p10, p11], axis=3)         # [n, h, w, 4, cout]
    out = stk.reshape(n, h, wd, 2, 2, cout).transpose(0, 1, 3, 2, 4, 5)
    return out.reshape(n, 2 * h, 2 * wd, cout)


def nchw_to_nhwc(x):
    return jnp.transpose(x, (0, 2, 3, 1))


def nhwc_to_nchw(x):
    return jnp.transpose(x, (0, 3, 1, 2))


# ---------------------------------------------------------------------------
# Deterministic parameter init (kaiming_normal_ with a=0.2, zero bias)
# TODO(synk): exact channel widths of the DispNet blocks are not in the given source;
#             a structurally identical but channel-scaled-down configuration is used.
# ---------------------------------------------------------------------------
def build_params(key):
    params = {}
    counter = [0]

    def add(name, kh, kw, cin, cout):
        k = jax.random.fold_in(key, counter[0]); counter[0] += 1
        gain = math.sqrt(2.0 / (1.0 + LEAKY_SLOPE ** 2))
        std = gain / math.sqrt(cin * kh * kw)
        params[name] = (jax.random.normal(k, (kh, kw, cin, cout), jnp.float32) * std,
                        jnp.zeros((cout,), jnp.float32))

    # DispnetEncoder
    add('enc.conv1', 7, 7, 3, 16)        # 1/2
    add('enc.conv2', 5, 5, 16, 32)       # 1/4
    add('enc.conv3', 5, 5, 32, 32)       # 1/8
    # DispnetContextEncoder
    add('ctx.conv', 3, 3, 32, 16)
    # LearnedFusion (per-source logit head over the 256 correlation channels; bias cancels in softmax)
    add('fusion.wconv', 1, 1, 256, 1)
    # DispnetCostvolumeEncoder (input = 256 corr channels + 16 ctx channels)
    add('cv.conv3_1', 3, 3, 256 + 16, 64)
    add('cv.conv4', 3, 3, 64, 64)        # 1/16
    add('cv.conv4_1', 3, 3, 64, 64)
    add('cv.conv5', 3, 3, 64, 64)        # 1/32
    add('cv.conv5_1', 3, 3, 64, 64)
    add('cv.conv6', 3, 3, 64, 128)       # 1/64
    add('cv.conv6_1', 3, 3, 128, 128)
    # DispnetDecoder
    add('dec.upconv5', 4, 4, 128, 64)
    add('dec.iconv5', 3, 3, 64 + 64, 64)
    add('dec.upconv4', 4, 4, 64, 64)
    add('dec.iconv4', 3, 3, 64 + 64, 64)
    add('dec.upconv3', 4, 4, 64, 32)
    add('dec.iconv3', 3, 3, 32 + 64, 32)
    add('dec.upconv2', 4, 4, 32, 16)
    add('dec.iconv2', 3, 3, 16 + 32, 16)
    add('dec.pred', 3, 3, 16, 2)         # channels: [invdepth, invdepth_log_b]
    return params


# ---------------------------------------------------------------------------
# Blocks
# ---------------------------------------------------------------------------
def dispnet_encoder(params, x):
    c1 = conv2d(x, params['enc.conv1'], stride=2)
    c2 = conv2d(c1, params['enc.conv2'], stride=2)
    c3 = conv2d(c2, params['enc.conv3'], stride=2)
    return {'conv1': c1, 'conv2': c2, 'conv3': c3}, c3


def dispnet_context_encoder(params, enc_key):
    return conv2d(enc_key, params['ctx.conv'], stride=1)


def _bilinear_gather_cmajor(feat_cp, us, vs, H, W):
    """feat_cp [B, C, H*W] (bf16); us, vs [B, D, P] -> warped [B, C, D, P] (bf16, zero outside)."""
    # TODO(synk): data-dependent bilinear gather kept in plain JAX (bf16 to halve HBM traffic).
    x0 = jnp.floor(us)
    y0 = jnp.floor(vs)
    wx = (us - x0).astype(jnp.bfloat16)[:, None]          # [B, 1, D, P]
    wy = (vs - y0).astype(jnp.bfloat16)[:, None]

    def corner(xi, yi):
        inb = ((xi >= 0) & (xi <= W - 1) & (yi >= 0) & (yi <= H - 1)).astype(jnp.bfloat16)
        xc = jnp.clip(xi, 0, W - 1).astype(jnp.int32)
        yc = jnp.clip(yi, 0, H - 1).astype(jnp.int32)
        idx = yc * W + xc                                  # [B, D, P]
        g = jax.vmap(lambda f, i: f[:, i])(feat_cp, idx)   # [B, C, D, P]
        return g * inb[:, None]

    g00 = corner(x0, y0)
    g01 = corner(x0 + 1, y0)
    g10 = corner(x0, y0 + 1)
    g11 = corner(x0 + 1, y0 + 1)
    top = g00 * (1.0 - wx) + g01 * wx
    bot = g10 * (1.0 - wx) + g11 * wx
    return top * (1.0 - wy) + bot * wy


def planesweep_correlation(feat_key, intrinsics_key, feat_sources, source_to_key_transforms,
                           intrinsics_sources, num_sampling_points, min_depth, max_depth,
                           image_hw):
    B, H8, W8, C = feat_key.shape
    P = H8 * W8
    Pp = pl.cdiv(P, 128) * 128                             # lane-pad the pixel axis
    img_h, img_w = image_hw
    scale = jnp.array([[W8 / img_w], [H8 / img_h], [1.0]], jnp.float32)   # intrinsics -> feat res

    # sampling uniformly in inverse depth between 1/max_depth and 1/min_depth
    invdepths = jnp.linspace(1.0 / max_depth, 1.0 / min_depth, num_sampling_points,
                             dtype=jnp.float32)
    depths = 1.0 / invdepths

    u, v = jnp.meshgrid(jnp.arange(W8, dtype=jnp.float32),
                        jnp.arange(H8, dtype=jnp.float32), indexing='xy')
    uu = jnp.concatenate([u.reshape(-1), jnp.zeros((Pp - P,), jnp.float32)])
    vv = jnp.concatenate([v.reshape(-1), jnp.zeros((Pp - P,), jnp.float32)])
    pix = jnp.stack([uu, vv, jnp.ones_like(uu)], axis=-1)                 # [Pp, 3]

    K_key = intrinsics_key * scale
    rays = jnp.einsum('bij,pj->bpi', jnp.linalg.inv(K_key), pix)          # [B, Pp, 3]

    key_cp = jnp.pad(feat_key.reshape(B, P, C).transpose(0, 2, 1),
                     ((0, 0), (0, 0), (0, Pp - P))).astype(jnp.bfloat16)  # [B, C, Pp]

    corrs, masks, any_valids = [], [], []
    for feat_src, T_s2k, intr_src in zip(feat_sources, source_to_key_transforms,
                                         intrinsics_sources):
        K_src = intr_src * scale
        T_k2s = jnp.linalg.inv(T_s2k)                                     # key -> source
        R, t = T_k2s[:, :3, :3], T_k2s[:, :3, 3]
        X = rays[:, None, :, :] * depths[None, :, None, None]             # [B, D, Pp, 3]
        Xs = jnp.einsum('bij,bdpj->bdpi', R, X) + t[:, None, None, :]
        proj = jnp.einsum('bij,bdpj->bdpi', K_src, Xs)
        z = proj[..., 2]
        zs = jnp.where(jnp.abs(z) < 1e-6, 1e-6, z)
        us = proj[..., 0] / zs
        vs = proj[..., 1] / zs
        valid = ((z > 1e-6) & (us >= 0) & (us <= W8 - 1) &
                 (vs >= 0) & (vs <= H8 - 1)).astype(jnp.float32)          # [B, D, Pp]
        feat_cp = feat_src.reshape(B, P, C).transpose(0, 2, 1).astype(jnp.bfloat16)
        warped = _bilinear_gather_cmajor(feat_cp, us, vs, H8, W8)         # [B, C, D, Pp] bf16
        corr = planesweep_corr_reduce(key_cp, warped, valid)              # Pallas: [B, D, Pp]
        corrs.append(corr)
        masks.append(valid)
        any_valids.append(jnp.max(valid, axis=1))                         # [B, Pp]
    return corrs, masks, any_valids, invdepths


def learned_fusion(params, corrs, any_valids, hw, P):
    # TODO(synk): exact LearnedFusion internals are not in the given source; implemented as a
    #             per-source linear logit over the D correlation channels + masked softmax-
    #             weighted sum over sources (fused inside a single Pallas kernel).
    H8, W8 = hw
    B, D, _ = corrs[0].shape
    corrs_st = jnp.stack(corrs, axis=1)                                   # [B, S, D, Pp]
    valid_st = jnp.stack(any_valids, axis=1)                              # [B, S, Pp]
    w = params['fusion.wconv'][0].reshape(D, 1)
    fused = fuse_correlations(corrs_st, valid_st, w)                      # Pallas: [B, D, Pp]
    fused = fused[:, :, :P]                                               # drop lane padding
    return fused.transpose(0, 2, 1).reshape(B, H8, W8, D)


def costvolume_encoder(params, fused_corr, ctx):
    x = jnp.concatenate([fused_corr.astype(jnp.bfloat16), ctx], axis=-1)
    c3_1 = conv2d(x, params['cv.conv3_1'], stride=1)
    c4 = conv2d(c3_1, params['cv.conv4'], stride=2)
    c4_1 = conv2d(c4, params['cv.conv4_1'], stride=1)
    c5 = conv2d(c4_1, params['cv.conv5'], stride=2)
    c5_1 = conv2d(c5, params['cv.conv5_1'], stride=1)
    c6 = conv2d(c5_1, params['cv.conv6'], stride=2)
    c6_1 = conv2d(c6, params['cv.conv6_1'], stride=1)
    all_enc = {'conv3_1': c3_1, 'conv4_1': c4_1, 'conv5_1': c5_1, 'conv6_1': c6_1}
    return all_enc, c6_1


def dispnet_decoder(params, enc_fused, all_enc):
    x = deconv2d(enc_fused, params['dec.upconv5'])                                  # 1/32
    x = conv2d(jnp.concatenate([x, all_enc['conv5_1']], axis=-1), params['dec.iconv5'], stride=1)
    x = deconv2d(x, params['dec.upconv4'])                                          # 1/16
    x = conv2d(jnp.concatenate([x, all_enc['conv4_1']], axis=-1), params['dec.iconv4'], stride=1)
    x = deconv2d(x, params['dec.upconv3'])                                          # 1/8
    x = conv2d(jnp.concatenate([x, all_enc['conv3_1']], axis=-1), params['dec.iconv3'], stride=1)
    x = deconv2d(x, params['dec.upconv2'])                                          # 1/4
    x = conv2d(jnp.concatenate([x, all_enc['conv2']], axis=-1), params['dec.iconv2'], stride=1)
    pred = conv2d(x, params['dec.pred'], stride=1, slope=None, out_dtype=jnp.float32)
    invdepth = nhwc_to_nchw(pred[..., 0:1])
    invdepth_log_b = nhwc_to_nchw(pred[..., 1:2])
    return {'invdepth': invdepth, 'invdepth_log_b': invdepth_log_b}


# ---------------------------------------------------------------------------
# RobustMVD.forward
# ---------------------------------------------------------------------------
def robust_mvd_forward(params, images, poses, intrinsics, keyview_idx):
    # TODO(synk): keyview_idx is a per-sample tensor in rmvd; a static python int is used here.
    image_key = images[keyview_idx]
    images_source = [im for i, im in enumerate(images) if i != keyview_idx]
    intrinsics_key = intrinsics[keyview_idx]
    intrinsics_source = [x for i, x in enumerate(intrinsics) if i != keyview_idx]
    source_to_key_transforms = [p for i, p in enumerate(poses) if i != keyview_idx]

    all_enc_key, enc_key = dispnet_encoder(params, nchw_to_nhwc(image_key))
    enc_sources = [dispnet_encoder(params, nchw_to_nhwc(im))[1] for im in images_source]
    ctx = dispnet_context_encoder(params, enc_key)

    corrs, masks, any_valids, _ = planesweep_correlation(
        feat_key=enc_key, intrinsics_key=intrinsics_key, feat_sources=enc_sources,
        source_to_key_transforms=source_to_key_transforms,
        intrinsics_sources=intrinsics_source,
        num_sampling_points=256, min_depth=0.4, max_depth=1000.0,
        image_hw=image_key.shape[-2:])

    H8, W8 = enc_key.shape[1], enc_key.shape[2]
    fused_corr = learned_fusion(params, corrs, any_valids, (H8, W8), H8 * W8)
    all_enc_fused, enc_fused = costvolume_encoder(params, fused_corr, ctx)
    dec = dispnet_decoder(params, enc_fused, {**all_enc_key, **all_enc_fused})

    depth, depth_uncertainty = depth_head(dec['invdepth'], dec['invdepth_log_b'])   # Pallas head
    pred = {'depth': depth, 'depth_uncertainty': depth_uncertainty}
    aux = dict(dec)
    aux['depth'] = depth
    aux['depth_uncertainty'] = depth_uncertainty
    return pred, aux


# ---------------------------------------------------------------------------
if __name__ == "__main__":
    key = jax.random.PRNGKey(0)
    pkey, ikey = jax.random.split(key)

    B, H, W = 2, 64, 64
    num_views = 2            # 1 key view + 1 source view
    keyview_idx = 0

    params = build_params(pkey)

    img_keys = jax.random.split(ikey, num_views)
    images = [jax.random.normal(k, (B, 3, H, W), jnp.float32) * 0.2 for k in img_keys]

    # intrinsics in pixel units of the (H, W) input image
    K = jnp.array([[0.9 * W, 0.0, 0.5 * W],
                   [0.0, 0.9 * H, 0.5 * H],
                   [0.0, 0.0, 1.0]], jnp.float32)
    intrinsics = [jnp.broadcast_to(K, (B, 3, 3)) for _ in range(num_views)]

    # poses: per-view source-to-key transforms; key view carries identity
    eye = jnp.broadcast_to(jnp.eye(4, dtype=jnp.float32), (B, 4, 4))
    T_src = jnp.eye(4, dtype=jnp.float32).at[0, 3].set(0.1)   # small x-baseline
    poses = [eye, jnp.broadcast_to(T_src, (B, 4, 4))]

    pred, aux = robust_mvd_forward(params, images, poses, intrinsics, keyview_idx)
    jax.block_until_ready(pred['depth'])
    jax.block_until_ready(pred['depth_uncertainty'])
    jax.block_until_ready(aux['invdepth'])

    assert pred['depth'].shape == (B, 1, H // 4, W // 4)
    assert pred['depth_uncertainty'].shape == (B, 1, H // 4, W // 4)
    print("KERNEL_OK")
</pallas_src>

<mosaic_0001>
module attributes {stable_mosaic.version = 11 : i64} {
  func.func @_mm_bias_act_kernel(%arg0: i32, %arg1: memref<512x256xbf16, #tpu.memory_space<vmem>>, %arg2: memref<256x128xbf16, #tpu.memory_space<vmem>>, %arg3: memref<1x128xf32, #tpu.memory_space<vmem>>, %arg4: memref<512x128xbf16, #tpu.memory_space<vmem>>) attributes {dimension_semantics = [#tpu.dimension_semantics<parallel>], iteration_bounds = array<i64: 4>, scalar_prefetch = 0 : i64, scratch_operands = 0 : i64, tpu.core_type = #tpu.core_type<tc>, window_params = [{transform_indices = @transform_0, window_bounds = array<i64: 512, 256>}, {pipeline_mode = #tpu.pipeline_mode<synchronous>, transform_indices = @transform_1, window_bounds = array<i64: 256, 128>}, {pipeline_mode = #tpu.pipeline_mode<synchronous>, transform_indices = @transform_2, window_bounds = array<i64: 1, 128>}, {transform_indices = @transform_3, window_bounds = array<i64: 512, 128>}]} {
    %c0 = arith.constant 0 : index
    %c0_0 = arith.constant 0 : index
    %0 = vector.load %arg1[%c0, %c0_0] : memref<512x256xbf16, #tpu.memory_space<vmem>>, vector<512x256xbf16>
    %c0_1 = arith.constant 0 : index
    %c0_2 = arith.constant 0 : index
    %1 = vector.load %arg2[%c0_1, %c0_2] : memref<256x128xbf16, #tpu.memory_space<vmem>>, vector<256x128xbf16>
    %cst = arith.constant dense<0.000000e+00> : vector<512x128xf32>
    %2 = tpu.matmul %0, %1, %cst {dimension_numbers = #tpu.dot_dimension_numbers<[1], [0], [0], [1], [0, 0, 1, 1], [], []>} : vector<512x256xbf16>, vector<256x128xbf16>, vector<512x128xf32> -> vector<512x128xf32>
    %c0_3 = arith.constant 0 : index
    %c0_4 = arith.constant 0 : index
    %3 = vector.load %arg3[%c0_3, %c0_4] : memref<1x128xf32, #tpu.memory_space<vmem>>, vector<1x128xf32>
    %4 = vector.broadcast %3 : vector<1x128xf32> to vector<512x128xf32>
    %5 = arith.addf %2, %4 : vector<512x128xf32>
    %cst_5 = arith.constant 0.000000e+00 : f32
    %6 = vector.broadcast %cst_5 : f32 to vector<512x128xf32>
    %7 = arith.cmpf oge, %5, %6 : vector<512x128xf32>
    %cst_6 = arith.constant 2.000000e-01 : f32
    %8 = vector.broadcast %cst_6 : f32 to vector<512x128xf32>
    %9 = arith.mulf %5, %8 : vector<512x128xf32>
    %10 = arith.select %7, %5, %9 : vector<512x128xi1>, vector<512x128xf32>
    %11 = arith.truncf %10 : vector<512x128xf32> to vector<512x128xbf16>
    %c0_7 = arith.constant 0 : index
    %c0_8 = arith.constant 0 : index
    %12 = vector.load %arg4[%c0_7, %c0_8] : memref<512x128xbf16, #tpu.memory_space<vmem>>, vector<512x128xbf16>
    tpu.vector_store %arg4[%c0_7, %c0_8], %11 {strides = array<i32>} : memref<512x128xbf16, #tpu.memory_space<vmem>>, vector<512x128xbf16>,
    return
  }
  func.func @transform_0(%arg0: i32) -> (i32, i32) {
    %c0_i32 = arith.constant 0 : i32
    %c0_i32_0 = arith.constant 0 : i32
    return %arg0, %c0_i32 : i32, i32
  }
  func.func @transform_1(%arg0: i32) -> (i32, i32) {
    %c0_i32 = arith.constant 0 : i32
    %c0_i32_0 = arith.constant 0 : i32
    %c0_i32_1 = arith.constant 0 : i32
    return %c0_i32, %c0_i32_0 : i32, i32
  }
  func.func @transform_2(%arg0: i32) -> (i32, i32) {
    %c0_i32 = arith.constant 0 : i32
    %c0_i32_0 = arith.constant 0 : i32
    %c0_i32_1 = arith.constant 0 : i32
    return %c0_i32, %c0_i32_0 : i32, i32
  }
  func.func @transform_3(%arg0: i32) -> (i32, i32) {
    %c0_i32 = arith.constant 0 : i32
    %c0_i32_0 = arith.constant 0 : i32
    return %arg0, %c0_i32 : i32, i32
  }
}

</mosaic_0001>

<bundles_post_ra>
// kernel: tpu_custom_call.1
= control target key start
LH: loop header
LB: loop body
LE: loop exit
PB: predicated region body
PF: predicated region fallthrough
CT: control target
= control target key end

     0   :  { %8 = vsyncpa [#allocation3], 0  ;;  %s2808_s0 = inlined_call_operand.hbm [shape: bf16[2048,256], index: 0, kind: input, shape index: {}]   ;;  %s2809_s1 = inlined_call_operand.hbm [shape: bf16[256,128], index: 1, kind: input, shape index: {}]   ;;  %s2810_s2 = inlined_call_operand.vmem [shape: f32[1,128], index: 2, kind: input, shape index: {}]   ;;  %s2811_s3 = inlined_call_operand.hbm [shape: bf16[2048,128], index: 3, kind: output, shape index: {}]  }
   0x1   :  { %10 = vsyncpa [#allocation3 + $0x1], 0 }
   0x2   :  { %11 = vsyncpa [#allocation6], 0 }
   0x3   :  { %12 = vsyncpa [#allocation4], 0 }
   0x4   :  { %14 = vsyncpa [#allocation4 + $0x1], 0  ;;  %s2413_s12 = smov 0   ;;  %s2415_s13 = smov 0  }
   0x5   :  { %s2417_s14 = smov 0   ;;  %s2419_s15 = smov 0  }
   0x6 LB: > { %s2434_s16 = sadd.s32 4294967295, %s2381_s15   ;;  %s1625_s17 = sadd.s32 4294967294, %s2381_s15   ;;  %s2381_s15 = sphi %s2419_s15, %s2830_s15   ;;  %s2377_s14 = sphi %s2417_s14, %s2829_s14   ;;  %s2373_s13 = sphi %s2415_s13, %s2828_s13   ;;  %s2369_s12 = sphi %s2413_s12, %s2827_s12  }
   0x7   : > { %p40_p0 = scmp.ne.s32.totalorder %s2373_s13, %s2369_s12  ;;  %p2812_p1 = scmp.eq.s32.totalorder %s2434_s16, 0 }
   0x8   : > { %p112_p3 = scmp.eq.s32.totalorder %s1625_s17, 3  ;;  %p1626_p5 = scmp.ge.s32.totalorder %s2381_s15, 1 }
   0x9   : > { %p2443_p4 = por %p2812_p1, %p40_p0  ;;  %p119_p7 = scmp.lt.s32.totalorder %s2381_s15, 5 }
   0xa   : > { %p2448_p6 = por %p112_p3, %p40_p0  ;;  %s2383_s21 = smov [#allocation5]  }
   0xb   : > { %s2815_s18 = scalar_select %p2443_p4, 1, 0 }
   0xc   : > { %s2816_s19 = scalar_select %p2448_p6, 1, 0 }
   0xd   : > { %p2453_p8 = pnand %p1626_p5, %p119_p7  ;;  %s131_s22 = sshll.u32 %s2383_s21, 4  ;;  %s132_s22 = int_to_ptr.vmem [resolvable:$true] %s131_s22 }
   0xe   : > { %s2466_s24 = sadd.s32 1, %s2381_s15   ;;  %s27_s25 = sadd.s32 1, %s2377_s14 }
   0xf   : > { %s2817_s20 = scalar_select %p2453_p8, 1, 0 }
  0x10   : > { %p2085_p9 = pneg %p2453_p8  ;;  %s24_s26 = ssub.s32 %s2381_s15, %s2466_s24 }
  0x11   : > { %s2253_s29 = scalar_lea.hbm %s2809_s1, 2048 }
  0x12   : > { %p2461_p10 = pnand %p2085_p9, %p2812_p1  ;;  %p2254_p11 = scmp.ne.s32.totalorder %s2809_s1, %s2253_s29 }
  0x13   : > { %p2260_p3 = scmp.lt.u32.totalorder %s2253_s29, %s2809_s1 }
  0x14   : > { %p2255_p12 = pneg %p2461_p10 }
  0x16   : > { %p2256_p13 = pnand %p2255_p12, %p2254_p11 }
  0x18   : > { %p2257_p0 = pneg %p2256_p13 }
  0x1a   : > { %p2262_p5 = pnand %p2260_p3, %p2257_p0 }
  0x1c   : > { %2265 = shalt.err (!%p2262_p5)
}
  0x1d   : > { %s2266_s7 = scalar_lea.vmem %s132_s22, 2048  ;;  %p2274_p2 = scmp.lt.s32.totalorder %s132_s22, %s132_s22 }
  0x1e   : > { %p2267_p7 = scmp.ne.s32.totalorder %s132_s22, %s2266_s7  ;;  %p2275_p6 = scmp.lt.s32.totalorder %s2266_s7, %s2266_s7 }
  0x20   : > { %p2269_p9 = pnand %p2267_p7, %p2255_p12  ;;  %p2276_p4 = por %p2275_p6, %p2274_p2 }
  0x22   : > { %p2270_p1 = pneg %p2269_p9 }
  0x24   : > { %p2277_p8 = pnand %p2276_p4, %p2270_p1 }
  0x26   : > { %2280 = shalt.err (!%p2277_p8)
}
  0x27   : > { %s2384_s8 = smov 64   ;;  %s2385_s9 = smov 4  }
  0x28   : > { %2088 = dma.hbm_to_vmem [thread:$0]  (!%p2461_p10), %s2809_s1, 2048, %s132_s22, [#allocation6], %s2384_s8, %s2384_s8, %s2385_s9  }
  0x29   : > { %p25_p11 = scmp.eq.s32.totalorder %s24_s26, 0  ;;  %p34_p2 = scmp.ne.s32.totalorder %s2377_s14, %s2373_s13 }
  0x2a   : > { %p35_p1 = scmp.eq.s32.totalorder %s2381_s15, 0  ;;  %p2098_p4 = scmp.lt.s32.totalorder %s2381_s15, 4 }
  0x2b   : > { %s2492_s17 = scalar_select %p25_p11, %s2377_s14, %s27_s25  }
  0x2c   : > { %p36_p6 = por %p35_p1, %p34_p2  ;;  %p2819_p8 = scmp.eq.s32.totalorder %s2434_s16, 3 }
  0x2d   : > { %s148_s27 = sand.u32 1, %s2377_s14   ;;  %s1788_s28 = sshll.u32 %s2381_s15, 13 }
  0x2e   : > { %p2496_p12 = por %p2819_p8, %p34_p2  ;;  %s1629_s29 = sshll.u32 %s148_s27, 9 }
  0x2f   : > { %s2505_s4 = scalar_lea.hbm %s2808_s0, %s1788_s28  ;;  %s152_s22 = scalar_lea.vmem [#allocation2], %s1629_s29 }
  0x30   : > { %s160_s25 = sshll.u32 %s152_s22, 4  ;;  %p2507_p10 = pnand %p2098_p4, %p36_p6  ;;  %s2511_s25 = int_to_ptr.vmem [resolvable:$true] %s160_s25 }
  0x31   : > { %s2513_s5 = scalar_lea.sflag [#allocation3], %s148_s27  ;;  %s2281_s6 = scalar_lea.hbm %s2505_s4, 8192 }
  0x32   : > { %p2282_p13 = scmp.ne.s32.totalorder %s2505_s4, %s2281_s6  ;;  %p2283_p0 = pneg %p2507_p10 }
  0x33   : > { %s2286_s9 = scalar_lea.hbm %s2808_s0, 32768  ;;  %p2287_p7 = scmp.lt.u32.totalorder %s2505_s4, %s2808_s0 }
  0x34   : > { %p2284_p3 = pnand %p2283_p0, %p2282_p13  ;;  %p2288_p9 = scmp.lt.u32.totalorder %s2286_s9, %s2281_s6 }
  0x35   : > { %p2290_p2 = scmp.lt.u32.totalorder %s2281_s6, %s2505_s4 }
  0x36   : > { %p2285_p5 = pneg %p2284_p3  ;;  %p2289_p11 = por %p2288_p9, %p2287_p7 }
  0x38   : > { %p2291_p1 = por %p2290_p2, %p2289_p11 }
  0x3a   : > { %p2292_p4 = pnand %p2291_p1, %p2285_p5 }
  0x3c   : > { %2295 = shalt.err (!%p2292_p4)
}
  0x3d   : > { %s2296_s27 = scalar_lea.vmem %s2511_s25, 8192  ;;  %s2386_s28 = smov [#allocation2]  }
  0x3e   : > { %p2297_p6 = scmp.ne.s32.totalorder %s2511_s25, %s2296_s27  ;;  %s2301_s29 = sshll.u32 %s2386_s28, 4  ;;  %s2302_s29 = int_to_ptr.vmem [resolvable:$false] %s2301_s29 }
  0x3f   : > { %s2303_s23 = scalar_lea.vmem %s2302_s29, 16384  ;;  %p2304_p3 = scmp.lt.s32.totalorder %s2511_s25, %s2302_s29 }
  0x40   : > { %p2299_p8 = pnand %p2297_p6, %p2283_p0  ;;  %p2305_p7 = scmp.lt.s32.totalorder %s2303_s23, %s2296_s27 }
  0x42   : > { %p2300_p13 = pneg %p2299_p8  ;;  %p2306_p9 = por %p2305_p7, %p2304_p3 }
  0x44   : > { %p2307_p11 = pnand %p2306_p9, %p2300_p13 }
  0x46   : > { %2310 = shalt.err (!%p2307_p11)
}
  0x47   : > { %s2387_s30 = smov 128   ;;  %s2388_s22 = smov 8  }
  0x48   : > { %2092 = dma.hbm_to_vmem [thread:$0]  (!%p2507_p10), %s2505_s4, 8192, %s2511_s25, %s2513_s5, %s2387_s30, %s2387_s30, %s2388_s22  }
  0x49   : > { %p2822_p0 = scmp.ne.s32.totalorder %s2817_s20, 0 }
  0x4a   : > { %s2544_s6 = sand.u32 (!%p2822_p0), 1, %s2373_s13   ;;  %p2823_p5 = scmp.ne.s32.totalorder (!%p2822_p0), %s2815_s18, 0 }
  0x4b   : > { %172 = sbr.rel (%p2822_p0) target bundleno = 507 (0x1fb), region = 32  ;;  %s1634_s7 = sshll.u32 (!%p2822_p0), %s2544_s6, 9 }
  0x4c   : > { %s175_s8 = scalar_lea.sflag (!%p2822_p0), [#allocation3], %s2544_s6  ;;  %s2548_s9 = scalar_lea.vmem (!%p2822_p0), [#allocation2], %s1634_s7 }
  0x52   : > { %2356 = dma.done.wait (%p2823_p5), %s175_s8, 8192  }
  0x53   : > { %2358 = vsyncadd (%p2823_p5), %s175_s8, 4294959104  ;;  %p2824_p10 = scmp.eq.s32.totalorder %s2434_s16, 0 }
  0x55   : > { %2360 = dma.done.wait (%p2824_p10), [#allocation6], 2048   ;;  %p2825_p2 = pmov %p2824_p10 }
  0x56   : > { %v2389_v0 = vmov 0   ;;  %v2141_v1 = vld [vmem:[#allocation5] sm:$0xff]   ;;  %v2142_v2 = vld [vmem:[#allocation5 + $0x8] sm:$0xff]   ;;  %v2143_v3 = vld [vmem:[#allocation5 + $0x10] sm:$0xff]   ;;  %s1636_s4 = sshll.u32 %s2544_s6, 8  ;;  %s1853_s26 = sshll.u32 %s2434_s16, 12 }
  0x57   : > { %2362 = vsyncadd (%p2825_p2), [#allocation6], 4294965248  ;;  %727 = vmatprep.subr.bf16.mxu0 %v2389_v0  ;;  %2045 = vmatprep.subr.bf16.mxu1 %v2389_v0  ;;  %v2144_v4 = vld [vmem:[#allocation5 + $0x18] sm:$0xff]   ;;  %v2145_v5 = vld [vmem:[#allocation5 + $0x20] sm:$0xff]   ;;  %s2666_s25 = scalar_lea.vmem [#allocation7], %s1636_s4  ;;  %s2761_s11 = scalar_lea.hbm %s2811_s3, %s1853_s26 }
  0x58   : > { %728 = vmatpush1.bf16.msra.mxu0 %v2141_v1  ;;  %2061 = vmatpush1.bf16.msra.mxu1 %v2141_v1  ;;  %v2159_v6 = vld [vmem:[%s2548_s9 + $0x4] ss:$8 sps:$4 sm:$0xff]   ;;  %v2147_v9 = vld [vmem:[#allocation5 + $0x30] sm:$0xff]   ;;  %v2148_v10 = vld [vmem:[#allocation5 + $0x38] sm:$0xff]   ;;  %s1542_s5 = sshll.u32 %s2666_s25, 4  ;;  %s1529_s27 = scalar_lea.sflag [#allocation4], %s2544_s6  ;;  %s2763_s5 = int_to_ptr.vmem [resolvable:$true] %s1542_s5 }
  0x59   : > { %729 = vmatprep.subr.bf16.mxu0 %v2389_v0  ;;  %2046 = vmatprep.subr.bf16.mxu1 %v2389_v0  ;;  %v2146_v7 = vld [vmem:[#allocation5 + $0x28] sm:$0xff]   ;;  %v2149_v11 = vld [vmem:[#allocation5 + $0x40] sm:$0xff]   ;;  %v2151_v13 = vld [vmem:[#allocation5 + $0x50] sm:$0xff]   ;;  %s2311_s28 = scalar_lea.vmem %s2763_s5, 4096  ;;  %s2390_s29 = smov [#allocation7]  }
  0x5a   : > { %v2162_v8 = vld [vmem:[%s2548_s9 + $0x104] ss:$8 sps:$4 sm:$0xff]   ;;  %759 = vmatprep.mubr.bf16.mxu0 %v2159_v6  ;;  %v2152_v14 = vld [vmem:[#allocation5 + $0x58] sm:$0xff]   ;;  %v2155_v17 = vld [vmem:[#allocation5 + $0x70] sm:$0xff]   ;;  %p2312_p1 = scmp.ne.s32.totalorder %s2763_s5, %s2311_s28  ;;  %s2315_s23 = sshll.u32 %s2390_s29, 4  ;;  %s2316_s23 = int_to_ptr.vmem [resolvable:$false] %s2315_s23 }
  0x5b   : > { %887 = vmatprep.mubr.bf16.mxu1 %v2162_v8  ;;  %v2150_v12 = vld [vmem:[#allocation5 + $0x48] sm:$0xff]   ;;  %v2153_v15 = vld [vmem:[#allocation5 + $0x60] sm:$0xff]   ;;  %v2156_v18 = vld [vmem:[#allocation5 + $0x78] sm:$0xff]   ;;  %s2317_s30 = scalar_lea.vmem %s2316_s23, 8192  ;;  %p2318_p8 = scmp.lt.s32.totalorder %s2763_s5, %s2316_s23 }
  0x5c   : > { %730 = vmatpush1.bf16.msra.mxu0 %v2142_v2  ;;  %2062 = vmatpush1.bf16.msra.mxu1 %v2142_v2  ;;  %v2154_v16 = vld [vmem:[#allocation5 + $0x68] sm:$0xff]   ;;  %v2163_v21 = vld [vmem:[%s2548_s9 + $0x14] ss:$8 sps:$4 sm:$0xff]   ;;  %v2167_v23 = vld [vmem:[%s2548_s9 + $0x10] ss:$8 sps:$4 sm:$0xff]   ;;  %p2313_p4 = pnand %p2312_p1, %p2496_p12  ;;  %p2319_p13 = scmp.lt.s32.totalorder %s2317_s30, %s2311_s28 }
  0x5d   : > { %731 = vmatprep.subr.bf16.mxu0 %v2389_v0  ;;  %2047 = vmatprep.subr.bf16.mxu1 %v2389_v0  ;;  %v2157_v19 = vld [vmem:[%s2548_s9] ss:$8 sps:$4 sm:$0xff]   ;;  %v2165_v22 = vld [vmem:[%s2548_s9 + $0x114] ss:$8 sps:$4 sm:$0xff]   ;;  %v2168_v24 = vld [vmem:[%s2548_s9 + $0x110] ss:$8 sps:$4 sm:$0xff]  }
  0x5e   : > { %v2160_v20 = vld [vmem:[%s2548_s9 + $0x100] ss:$8 sps:$4 sm:$0xff]   ;;  %v2169_v25 = vld [vmem:[%s2548_s9 + $0x24] ss:$8 sps:$4 sm:$0xff]   ;;  %v2175_v29 = vld [vmem:[%s2548_s9 + $0x34] ss:$8 sps:$4 sm:$0xff]   ;;  %p2314_p6 = pneg %p2313_p4  ;;  %p2320_p3 = por %p2319_p13, %p2318_p8 }
  0x5f   : > { %v2171_v26 = vld [vmem:[%s2548_s9 + $0x124] ss:$8 sps:$4 sm:$0xff]   ;;  %v2173_v27 = vld [vmem:[%s2548_s9 + $0x20] ss:$8 sps:$4 sm:$0xff]   ;;  %v2177_v30 = vld [vmem:[%s2548_s9 + $0x134] ss:$8 sps:$4 sm:$0xff]  }
  0x60   : > { %732 = vmatpush1.bf16.msra.mxu0 %v2143_v3  ;;  %2063 = vmatpush1.bf16.msra.mxu1 %v2143_v3  ;;  %v2174_v28 = vld [vmem:[%s2548_s9 + $0x120] ss:$8 sps:$4 sm:$0xff]   ;;  %v2179_v31 = vld [vmem:[%s2548_s9 + $0x30] ss:$8 sps:$4 sm:$0xff]   ;;  %v2181_v33 = vld [vmem:[%s2548_s9 + $0x44] ss:$8 sps:$4 sm:$0xff]   ;;  %p2321_p7 = pnand %p2320_p3, %p2314_p6 }
  0x61   : > { %733 = vmatprep.subr.bf16.mxu0 %v2389_v0  ;;  %2048 = vmatprep.subr.bf16.mxu1 %v2389_v0  ;;  %v2180_v32 = vld [vmem:[%s2548_s9 + $0x130] ss:$8 sps:$4 sm:$0xff]   ;;  %v2183_v34 = vld [vmem:[%s2548_s9 + $0x144] ss:$8 sps:$4 sm:$0xff]   ;;  %v2185_v35 = vld [vmem:[%s2548_s9 + $0x40] ss:$8 sps:$4 sm:$0xff]  }
  0x62   : > { %v2186_v36 = vld [vmem:[%s2548_s9 + $0x140] ss:$8 sps:$4 sm:$0xff]   ;;  %v2187_v37 = vld [vmem:[%s2548_s9 + $0x54] ss:$8 sps:$4 sm:$0xff]   ;;  %v2191_v39 = vld [vmem:[%s2548_s9 + $0x50] ss:$8 sps:$4 sm:$0xff]  }
  0x63   : > { %v2189_v38 = vld [vmem:[%s2548_s9 + $0x154] ss:$8 sps:$4 sm:$0xff]   ;;  %v2192_v40 = vld [vmem:[%s2548_s9 + $0x150] ss:$8 sps:$4 sm:$0xff]   ;;  %v2193_v41 = vld [vmem:[%s2548_s9 + $0x64] ss:$8 sps:$4 sm:$0xff]  }
  0x64   : > { %734 = vmatpush1.bf16.msra.mxu0 %v2144_v4  ;;  %2064 = vmatpush1.bf16.msra.mxu1 %v2144_v4  ;;  %v2195_v42 = vld [vmem:[%s2548_s9 + $0x164] ss:$8 sps:$4 sm:$0xff]   ;;  %v2197_v43 = vld [vmem:[%s2548_s9 + $0x60] ss:$8 sps:$4 sm:$0xff]   ;;  %v2199_v45 = vld [vmem:[%s2548_s9 + $0x74] ss:$8 sps:$4 sm:$0xff]  }
  0x65   : > { %735 = vmatprep.subr.bf16.mxu0 %v2389_v0  ;;  %2049 = vmatprep.subr.bf16.mxu1 %v2389_v0  ;;  %v2198_v44 = vld [vmem:[%s2548_s9 + $0x160] ss:$8 sps:$4 sm:$0xff]   ;;  %v2201_v46 = vld [vmem:[%s2548_s9 + $0x174] ss:$8 sps:$4 sm:$0xff]   ;;  %v2203_v47 = vld [vmem:[%s2548_s9 + $0x70] ss:$8 sps:$4 sm:$0xff]  }
  0x66   : > { %v2204_v48 = vld [vmem:[%s2548_s9 + $0x170] ss:$8 sps:$4 sm:$0xff]   ;;  %v2205_v49 = vld [vmem:[%s2548_s9 + $0x84] ss:$8 sps:$4 sm:$0xff]   ;;  %v2209_v51 = vld [vmem:[%s2548_s9 + $0x80] ss:$8 sps:$4 sm:$0xff]  }
  0x67   : > { %v2207_v50 = vld [vmem:[%s2548_s9 + $0x184] ss:$8 sps:$4 sm:$0xff]   ;;  %v2210_v52 = vld [vmem:[%s2548_s9 + $0x180] ss:$8 sps:$4 sm:$0xff]   ;;  %v2211_v53 = vld [vmem:[%s2548_s9 + $0x94] ss:$8 sps:$4 sm:$0xff]  }
  0x68   : > { %736 = vmatpush1.bf16.msra.mxu0 %v2145_v5  ;;  %2065 = vmatpush1.bf16.msra.mxu1 %v2145_v5  ;;  %v2213_v54 = vld [vmem:[%s2548_s9 + $0x194] ss:$8 sps:$4 sm:$0xff]   ;;  %v2215_v55 = vld [vmem:[%s2548_s9 + $0x90] ss:$8 sps:$4 sm:$0xff]   ;;  %v2217_v57 = vld [vmem:[%s2548_s9 + $0xa4] ss:$8 sps:$4 sm:$0xff]  }
  0x69   : > { %737 = vmatprep.subr.bf16.mxu0 %v2389_v0  ;;  %2050 = vmatprep.subr.bf16.mxu1 %v2389_v0  ;;  %v2216_v56 = vld [vmem:[%s2548_s9 + $0x190] ss:$8 sps:$4 sm:$0xff]   ;;  %v2219_v58 = vld [vmem:[%s2548_s9 + $0x1a4] ss:$8 sps:$4 sm:$0xff]   ;;  %v2221_v59 = vld [vmem:[%s2548_s9 + $0xa0] ss:$8 sps:$4 sm:$0xff]  }
  0x6a   : > { %v2222_v60 = vld [vmem:[%s2548_s9 + $0x1a0] ss:$8 sps:$4 sm:$0xff]   ;;  %v2223_v61 = vld [vmem:[%s2548_s9 + $0xb4] ss:$8 sps:$4 sm:$0xff]   ;;  %v2227_v63 = vld [vmem:[%s2548_s9 + $0xb0] ss:$8 sps:$4 sm:$0xff]  }
  0x6b   : > { %v2225_v62 = vld [vmem:[%s2548_s9 + $0x1b4] ss:$8 sps:$4 sm:$0xff]   ;;  %v2229_v1 = vld [vmem:[%s2548_s9 + $0xc4] ss:$8 sps:$4 sm:$0xff]   ;;  %v2233_v3 = vld [vmem:[%s2548_s9 + $0xc0] ss:$8 sps:$4 sm:$0xff]  }
  0x6c   : > { %738 = vmatpush1.bf16.msra.mxu0 %v2146_v7  ;;  %2066 = vmatpush1.bf16.msra.mxu1 %v2146_v7  ;;  %v2231_v2 = vld [vmem:[%s2548_s9 + $0x1c4] ss:$8 sps:$4 sm:$0xff]   ;;  %v2234_v4 = vld [vmem:[%s2548_s9 + $0x1c0] ss:$8 sps:$4 sm:$0xff]   ;;  %v2235_v5 = vld [vmem:[%s2548_s9 + $0xd4] ss:$8 sps:$4 sm:$0xff]  }
  0x6d   : > { %739 = vmatprep.subr.bf16.mxu0 %v2389_v0  ;;  %2051 = vmatprep.subr.bf16.mxu1 %v2389_v0  ;;  %v2237_v6 = vld [vmem:[%s2548_s9 + $0x1d4] ss:$8 sps:$4 sm:$0xff]   ;;  %v2239_v7 = vld [vmem:[%s2548_s9 + $0xd0] ss:$8 sps:$4 sm:$0xff]  }
  0x6e   : > { %v2240_v8 = vld [vmem:[%s2548_s9 + $0x1d0] ss:$8 sps:$4 sm:$0xff]  }
  0x70   : > { %740 = vmatpush1.bf16.msra.mxu0 %v2147_v9  ;;  %2067 = vmatpush1.bf16.msra.mxu1 %v2147_v9  ;;  %v2241_v9 = vld [vmem:[%s2548_s9 + $0xe4] ss:$8 sps:$4 sm:$0xff]  }
  0x71   : > { %741 = vmatprep.subr.bf16.mxu0 %v2389_v0  ;;  %2052 = vmatprep.subr.bf16.mxu1 %v2389_v0 }
  0x74   : > { %742 = vmatpush1.bf16.msra.mxu0 %v2148_v10  ;;  %2068 = vmatpush1.bf16.msra.mxu1 %v2148_v10  ;;  %v2243_v10 = vld [vmem:[%s2548_s9 + $0x1e4] ss:$8 sps:$4 sm:$0xff]  }
  0x75   : > { %743 = vmatprep.subr.bf16.mxu0 %v2389_v0  ;;  %2053 = vmatprep.subr.bf16.mxu1 %v2389_v0 }
  0x78   : > { %744 = vmatpush1.bf16.msra.mxu0 %v2149_v11  ;;  %2069 = vmatpush1.bf16.msra.mxu1 %v2149_v11  ;;  %v2245_v11 = vld [vmem:[%s2548_s9 + $0xe0] ss:$8 sps:$4 sm:$0xff]  }
  0x79   : > { %745 = vmatprep.subr.bf16.mxu0 %v2389_v0  ;;  %2054 = vmatprep.subr.bf16.mxu1 %v2389_v0 }
  0x7c   : > { %746 = vmatpush1.bf16.msra.mxu0 %v2150_v12  ;;  %2070 = vmatpush1.bf16.msra.mxu1 %v2150_v12  ;;  %v2246_v12 = vld [vmem:[%s2548_s9 + $0x1e0] ss:$8 sps:$4 sm:$0xff]  }
  0x7d   : > { %747 = vmatprep.subr.bf16.mxu0 %v2389_v0  ;;  %2055 = vmatprep.subr.bf16.mxu1 %v2389_v0 }
  0x80   : > { %748 = vmatpush1.bf16.msra.mxu0 %v2151_v13  ;;  %2071 = vmatpush1.bf16.msra.mxu1 %v2151_v13  ;;  %v2247_v13 = vld [vmem:[%s2548_s9 + $0xf4] ss:$8 sps:$4 sm:$0xff]  }
  0x81   : > { %749 = vmatprep.subr.bf16.mxu0 %v2389_v0  ;;  %2056 = vmatprep.subr.bf16.mxu1 %v2389_v0 }
  0x84   : > { %750 = vmatpush1.bf16.msra.mxu0 %v2152_v14  ;;  %2072 = vmatpush1.bf16.msra.mxu1 %v2152_v14  ;;  %v2249_v14 = vld [vmem:[%s2548_s9 + $0x1f4] ss:$8 sps:$4 sm:$0xff]  }
  0x85   : > { %751 = vmatprep.subr.bf16.mxu0 %v2389_v0  ;;  %2057 = vmatprep.subr.bf16.mxu1 %v2389_v0 }
  0x88   : > { %752 = vmatpush1.bf16.msra.mxu0 %v2153_v15  ;;  %2073 = vmatpush1.bf16.msra.mxu1 %v2153_v15  ;;  %v2251_v15 = vld [vmem:[%s2548_s9 + $0xf0] ss:$8 sps:$4 sm:$0xff]  }
  0x89   : > { %753 = vmatprep.subr.bf16.mxu0 %v2389_v0  ;;  %2058 = vmatprep.subr.bf16.mxu1 %v2389_v0 }
  0x8c   : > { %754 = vmatpush1.bf16.msra.mxu0 %v2154_v16  ;;  %2074 = vmatpush1.bf16.msra.mxu1 %v2154_v16  ;;  %v2252_v16 = vld [vmem:[%s2548_s9 + $0x1f0] ss:$8 sps:$4 sm:$0xff]  }
  0x8d   : > { %755 = vmatprep.subr.bf16.mxu0 %v2389_v0  ;;  %2059 = vmatprep.subr.bf16.mxu1 %v2389_v0 }
  0x90   : > { %756 = vmatpush1.bf16.msra.mxu0 %v2155_v17  ;;  %2075 = vmatpush1.bf16.msra.mxu1 %v2155_v17  ;;  %v2657_v17 = vld [vmem:[%s2810_s2] ss:$0 sm:$0xff] }
  0x91   : > { %757 = vmatprep.subr.bf16.mxu0 %v2389_v0  ;;  %2060 = vmatprep.subr.bf16.mxu1 %v2389_v0  ;;  %v2228_v0 = vld [vmem:[%s2548_s9 + $0x1b0] ss:$8 sps:$4 sm:$0xff]  }
  0x94   : > { %758 = vmatpush1.bf16.msra.mxu0 %v2156_v18  ;;  %2076 = vmatpush1.bf16.msra.mxu1 %v2156_v18 }
  0x97   : > { %760 = vmatmul.mubr.bf16.vlgmr.msra.gmra.mrb[0].mxu0 %v2157_v19  ;;  %888 = vmatmul.mubr.bf16.vlgmr.msra.gmra.mrb[0].mxu1 %v2160_v20 }
  0x98   : > { %767 = vmatprep.mubr.bf16.mxu0 %v2163_v21  ;;  %895 = vmatprep.mubr.bf16.mxu1 %v2165_v22 }
  0x9f   : > { %768 = vmatmul.mubr.bf16.gmra.mrb[4].mxu0 %v2167_v23  ;;  %896 = vmatmul.mubr.bf16.gmra.mrb[4].mxu1 %v2168_v24 }
  0xa0   : > { %775 = vmatprep.mubr.bf16.mxu0 %v2169_v25  ;;  %903 = vmatprep.mubr.bf16.mxu1 %v2171_v26 }
  0xa7   : > { %776 = vmatmul.mubr.bf16.gmra.mrb[8].mxu0 %v2173_v27  ;;  %904 = vmatmul.mubr.bf16.gmra.mrb[8].mxu1 %v2174_v28 }
  0xa8   : > { %783 = vmatprep.mubr.bf16.mxu0 %v2175_v29  ;;  %911 = vmatprep.mubr.bf16.mxu1 %v2177_v30 }
  0xaf   : > { %784 = vmatmul.mubr.bf16.gmra.mrb[12].mxu0 %v2179_v31  ;;  %912 = vmatmul.mubr.bf16.gmra.mrb[12].mxu1 %v2180_v32 }
  0xb0   : > { %791 = vmatprep.mubr.bf16.mxu0 %v2181_v33  ;;  %919 = vmatprep.mubr.bf16.mxu1 %v2183_v34 }
  0xb7   : > { %792 = vmatmul.mubr.bf16.gmra.mrb[16].mxu0 %v2185_v35  ;;  %920 = vmatmul.mubr.bf16.gmra.mrb[16].mxu1 %v2186_v36 }
  0xb8   : > { %799 = vmatprep.mubr.bf16.mxu0 %v2187_v37  ;;  %927 = vmatprep.mubr.bf16.mxu1 %v2189_v38 }
  0xbf   : > { %800 = vmatmul.mubr.bf16.gmra.mrb[20].mxu0 %v2191_v39  ;;  %928 = vmatmul.mubr.bf16.gmra.mrb[20].mxu1 %v2192_v40 }
  0xc0   : > { %807 = vmatprep.mubr.bf16.mxu0 %v2193_v41  ;;  %935 = vmatprep.mubr.bf16.mxu1 %v2195_v42 }
  0xc7   : > { %808 = vmatmul.mubr.bf16.gmra.mrb[24].mxu0 %v2197_v43  ;;  %936 = vmatmul.mubr.bf16.gmra.mrb[24].mxu1 %v2198_v44 }
  0xc8   : > { %815 = vmatprep.mubr.bf16.mxu0 %v2199_v45  ;;  %943 = vmatprep.mubr.bf16.mxu1 %v2201_v46 }
  0xcf   : > { %816 = vmatmul.mubr.bf16.gmra.mrb[28].mxu0 %v2203_v47  ;;  %944 = vmatmul.mubr.bf16.gmra.mrb[28].mxu1 %v2204_v48 }
  0xd0   : > { %823 = vmatprep.mubr.bf16.mxu0 %v2205_v49  ;;  %951 = vmatprep.mubr.bf16.mxu1 %v2207_v50 }
  0xd7   : > { %824 = vmatmul.mubr.bf16.gmra.mrb[32].mxu0 %v2209_v51  ;;  %952 = vmatmul.mubr.bf16.gmra.mrb[32].mxu1 %v2210_v52 }
  0xd8   : > { %831 = vmatprep.mubr.bf16.mxu0 %v2211_v53  ;;  %959 = vmatprep.mubr.bf16.mxu1 %v2213_v54 }
  0xdf   : > { %832 = vmatmul.mubr.bf16.gmra.mrb[36].mxu0 %v2215_v55  ;;  %960 = vmatmul.mubr.bf16.gmra.mrb[36].mxu1 %v2216_v56 }
  0xe0   : > { %839 = vmatprep.mubr.bf16.mxu0 %v2217_v57  ;;  %967 = vmatprep.mubr.bf16.mxu1 %v2219_v58 }
  0xe7   : > { %840 = vmatmul.mubr.bf16.gmra.mrb[40].mxu0 %v2221_v59  ;;  %968 = vmatmul.mubr.bf16.gmra.mrb[40].mxu1 %v2222_v60 }
  0xe8   : > { %847 = vmatprep.mubr.bf16.mxu0 %v2223_v61  ;;  %975 = vmatprep.mubr.bf16.mxu1 %v2225_v62 }
  0xef   : > { %848 = vmatmul.mubr.bf16.gmra.mrb[44].mxu0 %v2227_v63  ;;  %976 = vmatmul.mubr.bf16.gmra.mrb[44].mxu1 %v2228_v0 }
  0xf0   : > { %855 = vmatprep.mubr.bf16.mxu0 %v2229_v1  ;;  %983 = vmatprep.mubr.bf16.mxu1 %v2231_v2 }
  0xf7   : > { %856 = vmatmul.mubr.bf16.gmra.mrb[48].mxu0 %v2233_v3  ;;  %984 = vmatmul.mubr.bf16.gmra.mrb[48].mxu1 %v2234_v4 }
  0xf8   : > { %863 = vmatprep.mubr.bf16.mxu0 %v2235_v5  ;;  %991 = vmatprep.mubr.bf16.mxu1 %v2237_v6 }
  0xff   : > { %864 = vmatmul.mubr.bf16.gmra.mrb[52].mxu0 %v2239_v7  ;;  %992 = vmatmul.mubr.bf16.gmra.mrb[52].mxu1 %v2240_v8 }
 0x100   : > { %871 = vmatprep.mubr.bf16.mxu0 %v2241_v9  ;;  %999 = vmatprep.mubr.bf16.mxu1 %v2243_v10 }
 0x107   : > { %872 = vmatmul.mubr.bf16.gmra.mrb[56].mxu0 %v2245_v11  ;;  %1000 = vmatmul.mubr.bf16.gmra.mrb[56].mxu1 %v2246_v12 }
 0x108   : > { %879 = vmatprep.mubr.bf16.mxu0 %v2247_v13  ;;  %1007 = vmatprep.mubr.bf16.mxu1 %v2249_v14 }
 0x10f   : > { %880 = vmatmul.mubr.bf16.gmra.mrb[60].mxu0 %v2251_v15  ;;  %1008 = vmatmul.mubr.bf16.gmra.mrb[60].mxu1 %v2252_v16 }
 0x16a   : > { %v761_v18 = vpop.f32.mrb[0].mxu0  ;;  %v889_v19 = vpop.f32.mrb[0].mxu1 }
 0x16b   : > { %v762_v20 = vadd.f32 %v2657_v17, %v761_v18  ;;  %v890_v21 = vadd.f32 %v2657_v17, %v889_v19  ;;  %v763_v22 = vpop.f32.mrb[1].mxu0  ;;  %v891_v23 = vpop.f32.mrb[1].mxu1 }
 0x16c   : > { %v764_v24 = vpop.f32.mrb[2].mxu0  ;;  %v892_v25 = vpop.f32.mrb[2].mxu1 }
 0x16d   : > { %v1080_v26 = vmul.f32 0.2, %v762_v20  ;;  %v1112_v27 = vmul.f32 0.2, %v890_v21  ;;  %v765_v28 = vadd.f32 %v2657_v17, %v764_v24  ;;  %v893_v29 = vadd.f32 %v2657_v17, %v892_v25  ;;  %v766_v30 = vpop.f32.mrb[3].mxu0  ;;  %v894_v31 = vpop.f32.mrb[3].mxu1 }
 0x16e   : > { %vm1016_vm0 = vcmp.ge.f32.partialorder %v762_v20, 0.0  ;;  %vm1048_vm1 = vcmp.ge.f32.partialorder %v890_v21, 0.0 }
 0x16f   : > { %vm1017_vm2 = vcmp.ge.f32.partialorder %v765_v28, 0.0  ;;  %v1081_v32 = vmul.f32 0.2, %v765_v28  ;;  %vm1049_vm3 = vcmp.ge.f32.partialorder %v893_v29, 0.0  ;;  %v1113_v33 = vmul.f32 0.2, %v893_v29 }
 0x170   : > { %v1144_v34 = vsel %vm1016_vm0, %v762_v20, %v1080_v26  ;;  %v1176_v35 = vsel %vm1048_vm1, %v890_v21, %v1112_v27 }
 0x171   : > { %v1145_v36 = vsel %vm1017_vm2, %v765_v28, %v1081_v32  ;;  %v1177_v37 = vsel %vm1049_vm3, %v893_v29, %v1113_v33 }
 0x172   : > { %v769_v38 = vpop.f32.mrb[4].mxu0  ;;  %v897_v39 = vpop.f32.mrb[4].mxu1  ;;  %v1857_v40 = vpack.c.bf16 %v1145_v36, %v1144_v34  ;;  %v1937_v41 = vpack.c.bf16 %v1177_v37, %v1176_v35 }
 0x173   : > { %v770_v42 = vadd.f32 %v2657_v17, %v769_v38  ;;  %v898_v43 = vadd.f32 %v2657_v17, %v897_v39  ;;  %v771_v44 = vpop.f32.mrb[5].mxu0  ;;  %v899_v45 = vpop.f32.mrb[5].mxu1 }
 0x174   : > { %v772_v46 = vpop.f32.mrb[6].mxu0  ;;  %v900_v47 = vpop.f32.mrb[6].mxu1  ;;  %1858 = vst [vmem:[%s2666_s25] sm:$0xff] %v1857_v40   ;;  %2029 = vst [vmem:[%s2666_s25 + $0x80] sm:$0xff] %v1937_v41  }
 0x175   : > { %v1082_v48 = vmul.f32 0.2, %v770_v42  ;;  %v1114_v49 = vmul.f32 0.2, %v898_v43  ;;  %v773_v50 = vadd.f32 %v2657_v17, %v772_v46  ;;  %v901_v51 = vadd.f32 %v2657_v17, %v900_v47  ;;  %v774_v52 = vpop.f32.mrb[7].mxu0  ;;  %v902_v53 = vpop.f32.mrb[7].mxu1 }
 0x176   : > { %vm1018_vm4 = vcmp.ge.f32.partialorder %v770_v42, 0.0  ;;  %vm1050_vm5 = vcmp.ge.f32.partialorder %v898_v43, 0.0 }
 0x177   : > { %vm1019_vm6 = vcmp.ge.f32.partialorder %v773_v50, 0.0  ;;  %v1083_v54 = vmul.f32 0.2, %v773_v50  ;;  %vm1051_vm7 = vcmp.ge.f32.partialorder %v901_v51, 0.0  ;;  %v1115_v55 = vmul.f32 0.2, %v901_v51 }
 0x178   : > { %v1146_v56 = vsel %vm1018_vm4, %v770_v42, %v1082_v48  ;;  %v1178_v57 = vsel %vm1050_vm5, %v898_v43, %v1114_v49 }
 0x179   : > { %v1147_v58 = vsel %vm1019_vm6, %v773_v50, %v1083_v54  ;;  %v1179_v59 = vsel %vm1051_vm7, %v901_v51, %v1115_v55 }
 0x17a   : > { %v777_v60 = vpop.f32.mrb[8].mxu0  ;;  %v905_v61 = vpop.f32.mrb[8].mxu1  ;;  %v1862_v62 = vpack.c.bf16 %v1147_v58, %v1146_v56  ;;  %v1942_v63 = vpack.c.bf16 %v1179_v59, %v1178_v57 }
 0x17b   : > { %v778_v0 = vadd.f32 %v2657_v17, %v777_v60  ;;  %v906_v1 = vadd.f32 %v2657_v17, %v905_v61  ;;  %v779_v2 = vpop.f32.mrb[9].mxu0  ;;  %v907_v3 = vpop.f32.mrb[9].mxu1 }
 0x17c   : > { %v780_v4 = vpop.f32.mrb[10].mxu0  ;;  %v908_v5 = vpop.f32.mrb[10].mxu1  ;;  %2014 = vst [vmem:[%s2666_s25 + $0x8] sm:$0xff] %v1862_v62   ;;  %2030 = vst [vmem:[%s2666_s25 + $0x88] sm:$0xff] %v1942_v63  }
 0x17d   : > { %v1084_v6 = vmul.f32 0.2, %v778_v0  ;;  %v1116_v7 = vmul.f32 0.2, %v906_v1  ;;  %v781_v8 = vadd.f32 %v2657_v17, %v780_v4  ;;  %v909_v9 = vadd.f32 %v2657_v17, %v908_v5  ;;  %v782_v10 = vpop.f32.mrb[11].mxu0  ;;  %v910_v11 = vpop.f32.mrb[11].mxu1 }
 0x17e   : > { %vm1020_vm8 = vcmp.ge.f32.partialorder %v778_v0, 0.0  ;;  %vm1052_vm9 = vcmp.ge.f32.partialorder %v906_v1, 0.0 }
 0x17f   : > { %vm1021_vm10 = vcmp.ge.f32.partialorder %v781_v8, 0.0  ;;  %v1085_v12 = vmul.f32 0.2, %v781_v8  ;;  %vm1053_vm11 = vcmp.ge.f32.partialorder %v909_v9, 0.0  ;;  %v1117_v13 = vmul.f32 0.2, %v909_v9 }
 0x180   : > { %v1148_v14 = vsel %vm1020_vm8, %v778_v0, %v1084_v6  ;;  %v1180_v15 = vsel %vm1052_vm9, %v906_v1, %v1116_v7 }
 0x181   : > { %v1149_v16 = vsel %vm1021_vm10, %v781_v8, %v1085_v12  ;;  %v1181_v18 = vsel %vm1053_vm11, %v909_v9, %v1117_v13 }
 0x182   : > { %v785_v19 = vpop.f32.mrb[12].mxu0  ;;  %v913_v20 = vpop.f32.mrb[12].mxu1  ;;  %v1867_v21 = vpack.c.bf16 %v1149_v16, %v1148_v14  ;;  %v1947_v22 = vpack.c.bf16 %v1181_v18, %v1180_v15 }
 0x183   : > { %v786_v23 = vadd.f32 %v2657_v17, %v785_v19  ;;  %v914_v24 = vadd.f32 %v2657_v17, %v913_v20  ;;  %v787_v25 = vpop.f32.mrb[13].mxu0  ;;  %v915_v26 = vpop.f32.mrb[13].mxu1 }
 0x184   : > { %v788_v27 = vpop.f32.mrb[14].mxu0  ;;  %v916_v28 = vpop.f32.mrb[14].mxu1  ;;  %2015 = vst [vmem:[%s2666_s25 + $0x10] sm:$0xff] %v1867_v21   ;;  %2031 = vst [vmem:[%s2666_s25 + $0x90] sm:$0xff] %v1947_v22  }
 0x185   : > { %v1086_v29 = vmul.f32 0.2, %v786_v23  ;;  %v1118_v30 = vmul.f32 0.2, %v914_v24  ;;  %v789_v31 = vadd.f32 %v2657_v17, %v788_v27  ;;  %v917_v32 = vadd.f32 %v2657_v17, %v916_v28  ;;  %v790_v33 = vpop.f32.mrb[15].mxu0  ;;  %v918_v34 = vpop.f32.mrb[15].mxu1 }
 0x186   : > { %vm1022_vm12 = vcmp.ge.f32.partialorder %v786_v23, 0.0  ;;  %vm1054_vm13 = vcmp.ge.f32.partialorder %v914_v24, 0.0 }
 0x187   : > { %vm1023_vm14 = vcmp.ge.f32.partialorder %v789_v31, 0.0  ;;  %v1087_v35 = vmul.f32 0.2, %v789_v31  ;;  %vm1055_vm15 = vcmp.ge.f32.partialorder %v917_v32, 0.0  ;;  %v1119_v36 = vmul.f32 0.2, %v917_v32 }
 0x188   : > { %v1150_v37 = vsel %vm1022_vm12, %v786_v23, %v1086_v29  ;;  %v1182_v38 = vsel %vm1054_vm13, %v914_v24, %v1118_v30 }
 0x189   : > { %v1151_v39 = vsel %vm1023_vm14, %v789_v31, %v1087_v35  ;;  %v1183_v40 = vsel %vm1055_vm15, %v917_v32, %v1119_v36 }
 0x18a   : > { %v793_v41 = vpop.f32.mrb[16].mxu0  ;;  %v921_v42 = vpop.f32.mrb[16].mxu1  ;;  %v1872_v43 = vpack.c.bf16 %v1151_v39, %v1150_v37  ;;  %v1952_v44 = vpack.c.bf16 %v1183_v40, %v1182_v38 }
 0x18b   : > { %v794_v45 = vadd.f32 %v2657_v17, %v793_v41  ;;  %v922_v46 = vadd.f32 %v2657_v17, %v921_v42  ;;  %v795_v47 = vpop.f32.mrb[17].mxu0  ;;  %v923_v48 = vpop.f32.mrb[17].mxu1 }
 0x18c   : > { %v796_v49 = vpop.f32.mrb[18].mxu0  ;;  %v924_v50 = vpop.f32.mrb[18].mxu1  ;;  %2016 = vst [vmem:[%s2666_s25 + $0x18] sm:$0xff] %v1872_v43   ;;  %2032 = vst [vmem:[%s2666_s25 + $0x98] sm:$0xff] %v1952_v44  }
 0x18d   : > { %v1088_v51 = vmul.f32 0.2, %v794_v45  ;;  %v1120_v52 = vmul.f32 0.2, %v922_v46  ;;  %v797_v53 = vadd.f32 %v2657_v17, %v796_v49  ;;  %v925_v54 = vadd.f32 %v2657_v17, %v924_v50  ;;  %v798_v55 = vpop.f32.mrb[19].mxu0  ;;  %v926_v56 = vpop.f32.mrb[19].mxu1 }
 0x18e   : > { %vm1024_vm0 = vcmp.ge.f32.partialorder %v794_v45, 0.0  ;;  %vm1056_vm1 = vcmp.ge.f32.partialorder %v922_v46, 0.0 }
 0x18f   : > { %vm1025_vm2 = vcmp.ge.f32.partialorder %v797_v53, 0.0  ;;  %v1089_v57 = vmul.f32 0.2, %v797_v53  ;;  %vm1057_vm3 = vcmp.ge.f32.partialorder %v925_v54, 0.0  ;;  %v1121_v58 = vmul.f32 0.2, %v925_v54 }
 0x190   : > { %v1152_v59 = vsel %vm1024_vm0, %v794_v45, %v1088_v51  ;;  %v1184_v60 = vsel %vm1056_vm1, %v922_v46, %v1120_v52 }
 0x191   : > { %v1153_v61 = vsel %vm1025_vm2, %v797_v53, %v1089_v57  ;;  %v1185_v62 = vsel %vm1057_vm3, %v925_v54, %v1121_v58 }
 0x192   : > { %v801_v63 = vpop.f32.mrb[20].mxu0  ;;  %v929_v0 = vpop.f32.mrb[20].mxu1  ;;  %v1877_v1 = vpack.c.bf16 %v1153_v61, %v1152_v59  ;;  %v1957_v2 = vpack.c.bf16 %v1185_v62, %v1184_v60 }
 0x193   : > { %v802_v3 = vadd.f32 %v2657_v17, %v801_v63  ;;  %v930_v4 = vadd.f32 %v2657_v17, %v929_v0  ;;  %v803_v5 = vpop.f32.mrb[21].mxu0  ;;  %v931_v6 = vpop.f32.mrb[21].mxu1 }
 0x194   : > { %v804_v7 = vpop.f32.mrb[22].mxu0  ;;  %v932_v8 = vpop.f32.mrb[22].mxu1  ;;  %2017 = vst [vmem:[%s2666_s25 + $0x20] sm:$0xff] %v1877_v1   ;;  %2033 = vst [vmem:[%s2666_s25 + $0xa0] sm:$0xff] %v1957_v2  }
 0x195   : > { %v1090_v9 = vmul.f32 0.2, %v802_v3  ;;  %v1122_v10 = vmul.f32 0.2, %v930_v4  ;;  %v805_v11 = vadd.f32 %v2657_v17, %v804_v7  ;;  %v933_v12 = vadd.f32 %v2657_v17, %v932_v8  ;;  %v806_v13 = vpop.f32.mrb[23].mxu0  ;;  %v934_v14 = vpop.f32.mrb[23].mxu1 }
 0x196   : > { %vm1026_vm4 = vcmp.ge.f32.partialorder %v802_v3, 0.0  ;;  %vm1058_vm5 = vcmp.ge.f32.partialorder %v930_v4, 0.0 }
 0x197   : > { %vm1027_vm6 = vcmp.ge.f32.partialorder %v805_v11, 0.0  ;;  %v1091_v15 = vmul.f32 0.2, %v805_v11  ;;  %vm1059_vm7 = vcmp.ge.f32.partialorder %v933_v12, 0.0  ;;  %v1123_v16 = vmul.f32 0.2, %v933_v12 }
 0x198   : > { %v1154_v18 = vsel %vm1026_vm4, %v802_v3, %v1090_v9  ;;  %v1186_v19 = vsel %vm1058_vm5, %v930_v4, %v1122_v10 }
 0x199   : > { %v1155_v20 = vsel %vm1027_vm6, %v805_v11, %v1091_v15  ;;  %v1187_v21 = vsel %vm1059_vm7, %v933_v12, %v1123_v16 }
 0x19a   : > { %v809_v22 = vpop.f32.mrb[24].mxu0  ;;  %v937_v23 = vpop.f32.mrb[24].mxu1  ;;  %v1882_v24 = vpack.c.bf16 %v1155_v20, %v1154_v18  ;;  %v1962_v25 = vpack.c.bf16 %v1187_v21, %v1186_v19 }
 0x19b   : > { %v810_v26 = vadd.f32 %v2657_v17, %v809_v22  ;;  %v938_v27 = vadd.f32 %v2657_v17, %v937_v23  ;;  %v811_v28 = vpop.f32.mrb[25].mxu0  ;;  %v939_v29 = vpop.f32.mrb[25].mxu1 }
 0x19c   : > { %v812_v30 = vpop.f32.mrb[26].mxu0  ;;  %v940_v31 = vpop.f32.mrb[26].mxu1  ;;  %2018 = vst [vmem:[%s2666_s25 + $0x28] sm:$0xff] %v1882_v24   ;;  %2034 = vst [vmem:[%s2666_s25 + $0xa8] sm:$0xff] %v1962_v25  }
 0x19d   : > { %v1092_v32 = vmul.f32 0.2, %v810_v26  ;;  %v1124_v33 = vmul.f32 0.2, %v938_v27  ;;  %v813_v34 = vadd.f32 %v2657_v17, %v812_v30  ;;  %v941_v35 = vadd.f32 %v2657_v17, %v940_v31  ;;  %v814_v36 = vpop.f32.mrb[27].mxu0  ;;  %v942_v37 = vpop.f32.mrb[27].mxu1 }
 0x19e   : > { %vm1028_vm8 = vcmp.ge.f32.partialorder %v810_v26, 0.0  ;;  %vm1060_vm9 = vcmp.ge.f32.partialorder %v938_v27, 0.0 }
 0x19f   : > { %vm1029_vm10 = vcmp.ge.f32.partialorder %v813_v34, 0.0  ;;  %v1093_v38 = vmul.f32 0.2, %v813_v34  ;;  %vm1061_vm11 = vcmp.ge.f32.partialorder %v941_v35, 0.0  ;;  %v1125_v39 = vmul.f32 0.2, %v941_v35 }
 0x1a0   : > { %v1156_v40 = vsel %vm1028_vm8, %v810_v26, %v1092_v32  ;;  %v1188_v41 = vsel %vm1060_vm9, %v938_v27, %v1124_v33 }
 0x1a1   : > { %v1157_v42 = vsel %vm1029_vm10, %v813_v34, %v1093_v38  ;;  %v1189_v43 = vsel %vm1061_vm11, %v941_v35, %v1125_v39 }
 0x1a2   : > { %v817_v44 = vpop.f32.mrb[28].mxu0  ;;  %v945_v45 = vpop.f32.mrb[28].mxu1  ;;  %v1887_v46 = vpack.c.bf16 %v1157_v42, %v1156_v40  ;;  %v1967_v47 = vpack.c.bf16 %v1189_v43, %v1188_v41 }
 0x1a3   : > { %v818_v48 = vadd.f32 %v2657_v17, %v817_v44  ;;  %v946_v49 = vadd.f32 %v2657_v17, %v945_v45  ;;  %v819_v50 = vpop.f32.mrb[29].mxu0  ;;  %v947_v51 = vpop.f32.mrb[29].mxu1 }
 0x1a4   : > { %v820_v52 = vpop.f32.mrb[30].mxu0  ;;  %v948_v53 = vpop.f32.mrb[30].mxu1  ;;  %2019 = vst [vmem:[%s2666_s25 + $0x30] sm:$0xff] %v1887_v46   ;;  %2035 = vst [vmem:[%s2666_s25 + $0xb0] sm:$0xff] %v1967_v47  }
 0x1a5   : > { %v1094_v54 = vmul.f32 0.2, %v818_v48  ;;  %v1126_v55 = vmul.f32 0.2, %v946_v49  ;;  %v821_v56 = vadd.f32 %v2657_v17, %v820_v52  ;;  %v949_v57 = vadd.f32 %v2657_v17, %v948_v53  ;;  %v822_v58 = vpop.f32.mrb[31].mxu0  ;;  %v950_v59 = vpop.f32.mrb[31].mxu1 }
 0x1a6   : > { %vm1030_vm12 = vcmp.ge.f32.partialorder %v818_v48, 0.0  ;;  %vm1062_vm13 = vcmp.ge.f32.partialorder %v946_v49, 0.0 }
 0x1a7   : > { %vm1031_vm14 = vcmp.ge.f32.partialorder %v821_v56, 0.0  ;;  %v1095_v60 = vmul.f32 0.2, %v821_v56  ;;  %vm1063_vm15 = vcmp.ge.f32.partialorder %v949_v57, 0.0  ;;  %v1127_v61 = vmul.f32 0.2, %v949_v57 }
 0x1a8   : > { %v1158_v62 = vsel %vm1030_vm12, %v818_v48, %v1094_v54  ;;  %v1190_v63 = vsel %vm1062_vm13, %v946_v49, %v1126_v55 }
 0x1a9   : > { %v1159_v0 = vsel %vm1031_vm14, %v821_v56, %v1095_v60  ;;  %v1191_v1 = vsel %vm1063_vm15, %v949_v57, %v1127_v61 }
 0x1aa   : > { %v825_v2 = vpop.f32.mrb[32].mxu0  ;;  %v953_v3 = vpop.f32.mrb[32].mxu1  ;;  %v1892_v4 = vpack.c.bf16 %v1159_v0, %v1158_v62  ;;  %v1972_v5 = vpack.c.bf16 %v1191_v1, %v1190_v63 }
 0x1ab   : > { %v826_v6 = vadd.f32 %v2657_v17, %v825_v2  ;;  %v954_v7 = vadd.f32 %v2657_v17, %v953_v3  ;;  %v827_v8 = vpop.f32.mrb[33].mxu0  ;;  %v955_v9 = vpop.f32.mrb[33].mxu1 }
 0x1ac   : > { %v828_v10 = vpop.f32.mrb[34].mxu0  ;;  %v956_v11 = vpop.f32.mrb[34].mxu1  ;;  %2020 = vst [vmem:[%s2666_s25 + $0x38] sm:$0xff] %v1892_v4   ;;  %2036 = vst [vmem:[%s2666_s25 + $0xb8] sm:$0xff] %v1972_v5  }
 0x1ad   : > { %v1096_v12 = vmul.f32 0.2, %v826_v6  ;;  %v1128_v13 = vmul.f32 0.2, %v954_v7  ;;  %v829_v14 = vadd.f32 %v2657_v17, %v828_v10  ;;  %v957_v15 = vadd.f32 %v2657_v17, %v956_v11  ;;  %v830_v16 = vpop.f32.mrb[35].mxu0  ;;  %v958_v18 = vpop.f32.mrb[35].mxu1 }
 0x1ae   : > { %vm1032_vm0 = vcmp.ge.f32.partialorder %v826_v6, 0.0  ;;  %vm1064_vm1 = vcmp.ge.f32.partialorder %v954_v7, 0.0 }
 0x1af   : > { %vm1033_vm2 = vcmp.ge.f32.partialorder %v829_v14, 0.0  ;;  %v1097_v19 = vmul.f32 0.2, %v829_v14  ;;  %vm1065_vm3 = vcmp.ge.f32.partialorder %v957_v15, 0.0  ;;  %v1129_v20 = vmul.f32 0.2, %v957_v15 }
 0x1b0   : > { %v1160_v21 = vsel %vm1032_vm0, %v826_v6, %v1096_v12  ;;  %v1192_v22 = vsel %vm1064_vm1, %v954_v7, %v1128_v13 }
 0x1b1   : > { %v1161_v23 = vsel %vm1033_vm2, %v829_v14, %v1097_v19  ;;  %v1193_v24 = vsel %vm1065_vm3, %v957_v15, %v1129_v20 }
 0x1b2   : > { %v833_v25 = vpop.f32.mrb[36].mxu0  ;;  %v961_v26 = vpop.f32.mrb[36].mxu1  ;;  %v1897_v27 = vpack.c.bf16 %v1161_v23, %v1160_v21  ;;  %v1977_v28 = vpack.c.bf16 %v1193_v24, %v1192_v22 }
 0x1b3   : > { %v834_v29 = vadd.f32 %v2657_v17, %v833_v25  ;;  %v962_v30 = vadd.f32 %v2657_v17, %v961_v26  ;;  %v835_v31 = vpop.f32.mrb[37].mxu0  ;;  %v963_v32 = vpop.f32.mrb[37].mxu1 }
 0x1b4   : > { %v836_v33 = vpop.f32.mrb[38].mxu0  ;;  %v964_v34 = vpop.f32.mrb[38].mxu1  ;;  %2021 = vst [vmem:[%s2666_s25 + $0x40] sm:$0xff] %v1897_v27   ;;  %2037 = vst [vmem:[%s2666_s25 + $0xc0] sm:$0xff] %v1977_v28  }
 0x1b5   : > { %v1098_v35 = vmul.f32 0.2, %v834_v29  ;;  %v1130_v36 = vmul.f32 0.2, %v962_v30  ;;  %v837_v37 = vadd.f32 %v2657_v17, %v836_v33  ;;  %v965_v38 = vadd.f32 %v2657_v17, %v964_v34  ;;  %v838_v39 = vpop.f32.mrb[39].mxu0  ;;  %v966_v40 = vpop.f32.mrb[39].mxu1 }
 0x1b6   : > { %vm1034_vm4 = vcmp.ge.f32.partialorder %v834_v29, 0.0  ;;  %vm1066_vm5 = vcmp.ge.f32.partialorder %v962_v30, 0.0 }
 0x1b7   : > { %vm1035_vm6 = vcmp.ge.f32.partialorder %v837_v37, 0.0  ;;  %v1099_v41 = vmul.f32 0.2, %v837_v37  ;;  %vm1067_vm7 = vcmp.ge.f32.partialorder %v965_v38, 0.0  ;;  %v1131_v42 = vmul.f32 0.2, %v965_v38 }
 0x1b8   : > { %v1162_v43 = vsel %vm1034_vm4, %v834_v29, %v1098_v35  ;;  %v1194_v44 = vsel %vm1066_vm5, %v962_v30, %v1130_v36 }
 0x1b9   : > { %v1163_v45 = vsel %vm1035_vm6, %v837_v37, %v1099_v41  ;;  %v1195_v46 = vsel %vm1067_vm7, %v965_v38, %v1131_v42 }
 0x1ba   : > { %v841_v47 = vpop.f32.mrb[40].mxu0  ;;  %v969_v48 = vpop.f32.mrb[40].mxu1  ;;  %v1902_v49 = vpack.c.bf16 %v1163_v45, %v1162_v43  ;;  %v1982_v50 = vpack.c.bf16 %v1195_v46, %v1194_v44 }
 0x1bb   : > { %v842_v51 = vadd.f32 %v2657_v17, %v841_v47  ;;  %v970_v52 = vadd.f32 %v2657_v17, %v969_v48  ;;  %v843_v53 = vpop.f32.mrb[41].mxu0  ;;  %v971_v54 = vpop.f32.mrb[41].mxu1 }
 0x1bc   : > { %v844_v55 = vpop.f32.mrb[42].mxu0  ;;  %v972_v56 = vpop.f32.mrb[42].mxu1  ;;  %2022 = vst [vmem:[%s2666_s25 + $0x48] sm:$0xff] %v1902_v49   ;;  %2038 = vst [vmem:[%s2666_s25 + $0xc8] sm:$0xff] %v1982_v50  }
 0x1bd   : > { %v1100_v57 = vmul.f32 0.2, %v842_v51  ;;  %v1132_v58 = vmul.f32 0.2, %v970_v52  ;;  %v845_v59 = vadd.f32 %v2657_v17, %v844_v55  ;;  %v973_v60 = vadd.f32 %v2657_v17, %v972_v56  ;;  %v846_v61 = vpop.f32.mrb[43].mxu0  ;;  %v974_v62 = vpop.f32.mrb[43].mxu1 }
 0x1be   : > { %vm1036_vm8 = vcmp.ge.f32.partialorder %v842_v51, 0.0  ;;  %vm1068_vm9 = vcmp.ge.f32.partialorder %v970_v52, 0.0 }
 0x1bf   : > { %vm1037_vm10 = vcmp.ge.f32.partialorder %v845_v59, 0.0  ;;  %v1101_v63 = vmul.f32 0.2, %v845_v59  ;;  %vm1069_vm11 = vcmp.ge.f32.partialorder %v973_v60, 0.0  ;;  %v1133_v0 = vmul.f32 0.2, %v973_v60 }
 0x1c0   : > { %v1164_v1 = vsel %vm1036_vm8, %v842_v51, %v1100_v57  ;;  %v1196_v2 = vsel %vm1068_vm9, %v970_v52, %v1132_v58 }
 0x1c1   : > { %v1165_v3 = vsel %vm1037_vm10, %v845_v59, %v1101_v63  ;;  %v1197_v4 = vsel %vm1069_vm11, %v973_v60, %v1133_v0 }
 0x1c2   : > { %v849_v5 = vpop.f32.mrb[44].mxu0  ;;  %v977_v6 = vpop.f32.mrb[44].mxu1  ;;  %v1907_v7 = vpack.c.bf16 %v1165_v3, %v1164_v1  ;;  %v1987_v8 = vpack.c.bf16 %v1197_v4, %v1196_v2 }
 0x1c3   : > { %v850_v9 = vadd.f32 %v2657_v17, %v849_v5  ;;  %v978_v10 = vadd.f32 %v2657_v17, %v977_v6  ;;  %v851_v11 = vpop.f32.mrb[45].mxu0  ;;  %v979_v12 = vpop.f32.mrb[45].mxu1 }
 0x1c4   : > { %v852_v13 = vpop.f32.mrb[46].mxu0  ;;  %v980_v14 = vpop.f32.mrb[46].mxu1  ;;  %2023 = vst [vmem:[%s2666_s25 + $0x50] sm:$0xff] %v1907_v7   ;;  %2039 = vst [vmem:[%s2666_s25 + $0xd0] sm:$0xff] %v1987_v8  }
 0x1c5   : > { %v1102_v15 = vmul.f32 0.2, %v850_v9  ;;  %v1134_v16 = vmul.f32 0.2, %v978_v10  ;;  %v853_v18 = vadd.f32 %v2657_v17, %v852_v13  ;;  %v981_v19 = vadd.f32 %v2657_v17, %v980_v14  ;;  %v854_v20 = vpop.f32.mrb[47].mxu0  ;;  %v982_v21 = vpop.f32.mrb[47].mxu1 }
 0x1c6   : > { %vm1038_vm12 = vcmp.ge.f32.partialorder %v850_v9, 0.0  ;;  %vm1070_vm13 = vcmp.ge.f32.partialorder %v978_v10, 0.0 }
 0x1c7   : > { %vm1039_vm14 = vcmp.ge.f32.partialorder %v853_v18, 0.0  ;;  %v1103_v22 = vmul.f32 0.2, %v853_v18  ;;  %vm1071_vm15 = vcmp.ge.f32.partialorder %v981_v19, 0.0  ;;  %v1135_v23 = vmul.f32 0.2, %v981_v19 }
 0x1c8   : > { %v1166_v24 = vsel %vm1038_vm12, %v850_v9, %v1102_v15  ;;  %v1198_v25 = vsel %vm1070_vm13, %v978_v10, %v1134_v16 }
 0x1c9   : > { %v1167_v26 = vsel %vm1039_vm14, %v853_v18, %v1103_v22  ;;  %v1199_v27 = vsel %vm1071_vm15, %v981_v19, %v1135_v23 }
 0x1ca   : > { %v857_v28 = vpop.f32.mrb[48].mxu0  ;;  %v985_v29 = vpop.f32.mrb[48].mxu1  ;;  %v1912_v30 = vpack.c.bf16 %v1167_v26, %v1166_v24  ;;  %v1992_v31 = vpack.c.bf16 %v1199_v27, %v1198_v25 }
 0x1cb   : > { %v858_v32 = vadd.f32 %v2657_v17, %v857_v28  ;;  %v986_v33 = vadd.f32 %v2657_v17, %v985_v29  ;;  %v859_v34 = vpop.f32.mrb[49].mxu0  ;;  %v987_v35 = vpop.f32.mrb[49].mxu1 }
 0x1cc   : > { %v860_v36 = vpop.f32.mrb[50].mxu0  ;;  %v988_v37 = vpop.f32.mrb[50].mxu1  ;;  %2024 = vst [vmem:[%s2666_s25 + $0x58] sm:$0xff] %v1912_v30   ;;  %2040 = vst [vmem:[%s2666_s25 + $0xd8] sm:$0xff] %v1992_v31  }
 0x1cd   : > { %v1104_v38 = vmul.f32 0.2, %v858_v32  ;;  %v1136_v39 = vmul.f32 0.2, %v986_v33  ;;  %v861_v40 = vadd.f32 %v2657_v17, %v860_v36  ;;  %v989_v41 = vadd.f32 %v2657_v17, %v988_v37  ;;  %v862_v42 = vpop.f32.mrb[51].mxu0  ;;  %v990_v43 = vpop.f32.mrb[51].mxu1 }
 0x1ce   : > { %vm1040_vm0 = vcmp.ge.f32.partialorder %v858_v32, 0.0  ;;  %vm1072_vm1 = vcmp.ge.f32.partialorder %v986_v33, 0.0 }
 0x1cf   : > { %vm1041_vm2 = vcmp.ge.f32.partialorder %v861_v40, 0.0  ;;  %v1105_v44 = vmul.f32 0.2, %v861_v40  ;;  %vm1073_vm3 = vcmp.ge.f32.partialorder %v989_v41, 0.0  ;;  %v1137_v45 = vmul.f32 0.2, %v989_v41 }
 0x1d0   : > { %v1168_v46 = vsel %vm1040_vm0, %v858_v32, %v1104_v38  ;;  %v1200_v47 = vsel %vm1072_vm1, %v986_v33, %v1136_v39 }
 0x1d1   : > { %v1169_v48 = vsel %vm1041_vm2, %v861_v40, %v1105_v44  ;;  %v1201_v49 = vsel %vm1073_vm3, %v989_v41, %v1137_v45 }
 0x1d2   : > { %v865_v50 = vpop.f32.mrb[52].mxu0  ;;  %v993_v51 = vpop.f32.mrb[52].mxu1  ;;  %v1917_v52 = vpack.c.bf16 %v1169_v48, %v1168_v46  ;;  %v1997_v53 = vpack.c.bf16 %v1201_v49, %v1200_v47 }
 0x1d3   : > { %v866_v54 = vadd.f32 %v2657_v17, %v865_v50  ;;  %v994_v55 = vadd.f32 %v2657_v17, %v993_v51  ;;  %v867_v56 = vpop.f32.mrb[53].mxu0  ;;  %v995_v57 = vpop.f32.mrb[53].mxu1 }
 0x1d4   : > { %v868_v58 = vpop.f32.mrb[54].mxu0  ;;  %v996_v59 = vpop.f32.mrb[54].mxu1  ;;  %2025 = vst [vmem:[%s2666_s25 + $0x60] sm:$0xff] %v1917_v52   ;;  %2041 = vst [vmem:[%s2666_s25 + $0xe0] sm:$0xff] %v1997_v53  }
 0x1d5   : > { %v1106_v60 = vmul.f32 0.2, %v866_v54  ;;  %v1138_v61 = vmul.f32 0.2, %v994_v55  ;;  %v869_v62 = vadd.f32 %v2657_v17, %v868_v58  ;;  %v997_v63 = vadd.f32 %v2657_v17, %v996_v59  ;;  %v870_v0 = vpop.f32.mrb[55].mxu0  ;;  %v998_v1 = vpop.f32.mrb[55].mxu1 }
 0x1d6   : > { %vm1042_vm4 = vcmp.ge.f32.partialorder %v866_v54, 0.0  ;;  %vm1074_vm5 = vcmp.ge.f32.partialorder %v994_v55, 0.0 }
 0x1d7   : > { %vm1043_vm6 = vcmp.ge.f32.partialorder %v869_v62, 0.0  ;;  %v1107_v2 = vmul.f32 0.2, %v869_v62  ;;  %vm1075_vm7 = vcmp.ge.f32.partialorder %v997_v63, 0.0  ;;  %v1139_v3 = vmul.f32 0.2, %v997_v63 }
 0x1d8   : > { %v1170_v4 = vsel %vm1042_vm4, %v866_v54, %v1106_v60  ;;  %v1202_v5 = vsel %vm1074_vm5, %v994_v55, %v1138_v61 }
 0x1d9   : > { %v1171_v6 = vsel %vm1043_vm6, %v869_v62, %v1107_v2  ;;  %v1203_v7 = vsel %vm1075_vm7, %v997_v63, %v1139_v3 }
 0x1da   : > { %v873_v8 = vpop.f32.mrb[56].mxu0  ;;  %v1001_v9 = vpop.f32.mrb[56].mxu1  ;;  %v1922_v10 = vpack.c.bf16 %v1171_v6, %v1170_v4  ;;  %v2002_v11 = vpack.c.bf16 %v1203_v7, %v1202_v5 }
 0x1db   : > { %v874_v12 = vadd.f32 %v2657_v17, %v873_v8  ;;  %v1002_v13 = vadd.f32 %v2657_v17, %v1001_v9  ;;  %v875_v14 = vpop.f32.mrb[57].mxu0  ;;  %v1003_v15 = vpop.f32.mrb[57].mxu1 }
 0x1dc   : > { %v876_v16 = vpop.f32.mrb[58].mxu0  ;;  %v1004_v18 = vpop.f32.mrb[58].mxu1  ;;  %2026 = vst [vmem:[%s2666_s25 + $0x68] sm:$0xff] %v1922_v10   ;;  %2042 = vst [vmem:[%s2666_s25 + $0xe8] sm:$0xff] %v2002_v11  }
 0x1dd   : > { %v1108_v19 = vmul.f32 0.2, %v874_v12  ;;  %v1140_v20 = vmul.f32 0.2, %v1002_v13  ;;  %v877_v21 = vadd.f32 %v2657_v17, %v876_v16  ;;  %v1005_v22 = vadd.f32 %v2657_v17, %v1004_v18  ;;  %v878_v23 = vpop.f32.mrb[59].mxu0  ;;  %v1006_v24 = vpop.f32.mrb[59].mxu1 }
 0x1de   : > { %vm1044_vm8 = vcmp.ge.f32.partialorder %v874_v12, 0.0  ;;  %vm1076_vm9 = vcmp.ge.f32.partialorder %v1002_v13, 0.0 }
 0x1df   : > { %vm1045_vm10 = vcmp.ge.f32.partialorder %v877_v21, 0.0  ;;  %v1109_v25 = vmul.f32 0.2, %v877_v21  ;;  %vm1077_vm11 = vcmp.ge.f32.partialorder %v1005_v22, 0.0  ;;  %v1141_v26 = vmul.f32 0.2, %v1005_v22 }
 0x1e0   : > { %v1172_v27 = vsel %vm1044_vm8, %v874_v12, %v1108_v19  ;;  %v1204_v28 = vsel %vm1076_vm9, %v1002_v13, %v1140_v20 }
 0x1e1   : > { %v1173_v29 = vsel %vm1045_vm10, %v877_v21, %v1109_v25  ;;  %v1205_v30 = vsel %vm1077_vm11, %v1005_v22, %v1141_v26 }
 0x1e2   : > { %v881_v31 = vpop.f32.mrb[60].mxu0  ;;  %v1009_v32 = vpop.f32.mrb[60].mxu1  ;;  %v1927_v33 = vpack.c.bf16 %v1173_v29, %v1172_v27  ;;  %v2007_v34 = vpack.c.bf16 %v1205_v30, %v1204_v28 }
 0x1e3   : > { %v882_v35 = vadd.f32 %v2657_v17, %v881_v31  ;;  %v1010_v36 = vadd.f32 %v2657_v17, %v1009_v32  ;;  %v883_v37 = vpop.f32.mrb[61].mxu0  ;;  %v1011_v38 = vpop.f32.mrb[61].mxu1 }
 0x1e4   : > { %v884_v39 = vpop.f32.mrb[62].mxu0  ;;  %v1012_v40 = vpop.f32.mrb[62].mxu1  ;;  %2027 = vst [vmem:[%s2666_s25 + $0x70] sm:$0xff] %v1927_v33   ;;  %2043 = vst [vmem:[%s2666_s25 + $0xf0] sm:$0xff] %v2007_v34  }
 0x1e5   : > { %v1110_v41 = vmul.f32 0.2, %v882_v35  ;;  %v1142_v42 = vmul.f32 0.2, %v1010_v36  ;;  %v885_v43 = vadd.f32 %v2657_v17, %v884_v39  ;;  %v1013_v44 = vadd.f32 %v2657_v17, %v1012_v40  ;;  %v886_v45 = vpop.f32.mrb[63].mxu0  ;;  %v1014_v46 = vpop.f32.mrb[63].mxu1 }
 0x1e6   : > { %vm1046_vm12 = vcmp.ge.f32.partialorder %v882_v35, 0.0  ;;  %vm1078_vm13 = vcmp.ge.f32.partialorder %v1010_v36, 0.0 }
 0x1e7   : > { %vm1047_vm14 = vcmp.ge.f32.partialorder %v885_v43, 0.0  ;;  %v1111_v47 = vmul.f32 0.2, %v885_v43  ;;  %vm1079_vm15 = vcmp.ge.f32.partialorder %v1013_v44, 0.0  ;;  %v1143_v48 = vmul.f32 0.2, %v1013_v44 }
 0x1e8   : > { %v1174_v49 = vsel %vm1046_vm12, %v882_v35, %v1110_v41  ;;  %v1206_v17 = vsel %vm1078_vm13, %v1010_v36, %v1142_v42 }
 0x1e9   : > { %v1175_v50 = vsel %vm1047_vm14, %v885_v43, %v1111_v47  ;;  %v1207_v51 = vsel %vm1079_vm15, %v1013_v44, %v1143_v48 }
 0x1ea   : > { %v1932_v52 = vpack.c.bf16 %v1175_v50, %v1174_v49  ;;  %v2012_v53 = vpack.c.bf16 %v1207_v51, %v1206_v17 }
 0x1ec   : > { %2028 = vst [vmem:[%s2666_s25 + $0x78] sm:$0xff] %v1932_v52   ;;  %2044 = vst [vmem:[%s2666_s25 + $0xf8] sm:$0xff] %v2012_v53  }
 0x1ed   : > { %2324 = shalt.err (!%p2321_p7)
}
 0x1ee   : > { %s2325_s22 = scalar_lea.hbm %s2761_s11, 4096  ;;  %s2329_s9 = scalar_lea.hbm %s2811_s3, 16384 }
 0x1ef   : > { %p2326_p9 = scmp.ne.s32.totalorder %s2761_s11, %s2325_s22  ;;  %p2330_p5 = scmp.lt.u32.totalorder %s2761_s11, %s2811_s3 }
 0x1f0   : > { %p2331_p10 = scmp.lt.u32.totalorder %s2329_s9, %s2325_s22  ;;  %p2333_p1 = scmp.lt.u32.totalorder %s2325_s22, %s2761_s11 }
 0x1f1   : > { %p2327_p11 = pnand %p2326_p9, %p2496_p12 }
 0x1f2   : > { %p2332_p2 = por %p2331_p10, %p2330_p5 }
 0x1f3   : > { %p2328_p0 = pneg %p2327_p11 }
 0x1f4   : > { %p2334_p4 = por %p2333_p1, %p2332_p2 }
 0x1f6   : > { %p2335_p6 = pnand %p2334_p4, %p2328_p0 }
 0x1f8   : > { %2338 = shalt.err (!%p2335_p6)
}
 0x1f9   : > { %s2391_s4 = smov 64   ;;  %s2392_s25 = smov 4  }
 0x1fa   : > { %2083 = dma.vmem_to_hbm [thread:$0]  (%p2496_p12), %s2763_s5, 4096, %s2761_s11, %s1529_s27, %s2391_s4, %s2391_s4, %s2392_s25  }
 0x1fb PF: > { %p2100_p8 = scmp.ge.s32.totalorder %s2381_s15, 2  ;;  %s1557_s26 = sand.u32 1, %s2369_s12  }
 0x1fc   : > { %p2826_p13 = scmp.ne.s32.totalorder %s2816_s19, 0  ;;  %s1558_s16 = scalar_lea.sflag [#allocation4], %s1557_s26 }
 0x1fe   : > { %p2094_p3 = pnand %p2100_p8, %p2826_p13 }
 0x200   : > { %2364 = dma.done.wait (!%p2094_p3), %s1558_s16, 4096  }
 0x201   : > { %2366 = vsyncadd (!%p2094_p3), %s1558_s16, 4294963200  ;;  %p17_p7 = scmp.ge.s32.totalorder %s2466_s24, 6   ;;  %s2827_s12 = smov %s2373_s13 }
 0x202   : > { %s2828_s13 = smov %s2377_s14  ;;  %s2829_s14 = smov %s2492_s17 }
 0x203   : > { %s2830_s15 = smov %s2466_s24  ;;  %19 = sbr.rel (!%p17_p7) target bundleno = 6 (0x6), region = 81 }
 0x20a   :  { %1563 = vsyncpa [#allocation3], 1 }
 0x20b   :  { %1565 = vsyncpa [#allocation3 + $0x1], 1 }
 0x20c   :  { %1566 = vsyncpa [#allocation6], 1 }
 0x20d   :  { %1567 = vsyncpa [#allocation4], 1 }
 0x20e   :  { %1569 = vsyncpa [#allocation4 + $0x1], 1 }

</bundles_post_ra>
